<compile_context>
chip_gen: v5e
topology: v5e:2x2
jax: 0.10.0
libtpu: 0.0.40
codegen_flags: <defaults>
</compile_context>

<pallas_src>
import jax
import jax.numpy as jnp
from jax.experimental import pallas as pl
from jax.experimental.pallas import tpu as pltpu


def _make_nerf_kernel(num_hidden_mats, num_out):
    """Kernel body for a NeRF MLP with `num_hidden_mats` hidden->hidden layers."""

    def kernel(*refs):
        x_ref = refs[0]          # (F*Din, T)  replicated coords, N on lanes
        scale_ref = refs[1]      # (F*Din, 1)  per-row frequency
        w0s_ref = refs[2]        # (H, F*Din)  first layer acting on sin(.)
        w0c_ref = refs[3]        # (H, F*Din)  first layer acting on cos(.)
        b0_ref = refs[4]         # (H, 1)
        idx = 5
        hidden = []
        for _ in range(num_hidden_mats):
            hidden.append((refs[idx], refs[idx + 1]))  # (H, H), (H, 1)
            idx += 2
        wo_ref = refs[idx]       # (C, H)
        bo_ref = refs[idx + 1]   # (C, 1)
        out_ref = refs[idx + 2]  # (C, T)  merged rgb|sigma output

        # Positional encoding on the VPU/EUP (no MXU on this path).
        pre = x_ref[...].astype(jnp.float32) * scale_ref[...]
        s = jnp.sin(pre)
        c = jnp.cos(pre)

        # First linear on concat([sin, cos]) folded into two lane-dense matmuls.
        h = (jnp.dot(w0s_ref[...], s, preferred_element_type=jnp.float32)
             + jnp.dot(w0c_ref[...], c, preferred_element_type=jnp.float32)
             + b0_ref[...])
        h = jnp.maximum(h, 0.0)

        for w_ref, b_ref in hidden:
            h = jnp.dot(w_ref[...], h, preferred_element_type=jnp.float32) + b_ref[...]
            h = jnp.maximum(h, 0.0)

        out = jnp.dot(wo_ref[...], h, preferred_element_type=jnp.float32) + bo_ref[...]

        # Merged head: rows [0, C-2] -> sigmoid (rgb), row C-1 -> softplus (sigma).
        row = jax.lax.broadcasted_iota(jnp.int32, out.shape, 0)
        out_ref[...] = jnp.where(row < num_out - 1,
                                 jax.nn.sigmoid(out),
                                 jax.nn.softplus(out))

    return kernel


def _round_up(a, b):
    return -(-a // b) * b


def simple_nerf_pallas(x, params, *, tile_n=1024):
    """
    x: (num_rays, num_samples, in_features) float32
    params: dict with keys freqs, w0_sin, w0_cos, b0, hidden (list of (w, b)), w_out, b_out
    Returns (rgb, sigma) with shapes (R, S, out_features-1) and (R, S).
    """
    R, S, Din = x.shape
    N = R * S

    freqs = params["freqs"].astype(jnp.float32)       # (F,)
    F = freqs.shape[0]
    w0s, w0c, b0 = params["w0_sin"], params["w0_cos"], params["b0"]
    hidden = params["hidden"]
    wo, bo = params["w_out"], params["b_out"]
    H = w0s.shape[1]
    C = wo.shape[1]

    # Row tile: multiple of 128, never larger than the padded row count.
    tile_n = max(128, _round_up(min(tile_n, _round_up(N, 128)), 128))
    padded_N = _round_up(N, tile_n)

    # Lane-major coords replicated per frequency: row f*Din+d, column n.
    x2d = x.reshape(N, Din).astype(jnp.float32)
    x_rep_t = jnp.tile(x2d, (1, F)).T                  # (F*Din, N)
    if padded_N != N:
        x_rep_t = jnp.pad(x_rep_t, ((0, 0), (0, padded_N - N)))
    scale = jnp.repeat(freqs, Din).reshape(F * Din, 1)  # scale[f*Din+d] = freqs[f]

    full = lambda shp: pl.BlockSpec(shp, lambda i: (0, 0))
    in_specs = [
        pl.BlockSpec((F * Din, tile_n), lambda i: (0, i)),   # coord tile
        full((F * Din, 1)),
        full((H, F * Din)), full((H, F * Din)), full((H, 1)),
    ]
    operands = [x_rep_t, scale, w0s.T, w0c.T, b0.T]
    for (w, b) in hidden:
        in_specs += [full((H, H)), full((H, 1))]
        operands += [w.T, b.T]
    in_specs += [full((C, H)), full((C, 1))]
    operands += [wo.T, bo.T]

    grid = (padded_N // tile_n,)
    out_shape = jax.ShapeDtypeStruct((C, padded_N), jnp.float32)
    out_specs = pl.BlockSpec((C, tile_n), lambda i: (0, i))

    n_hidden = len(hidden)
    flops = 2 * padded_N * (2 * F * Din * H + n_hidden * H * H + H * C)
    transcendentals = padded_N * (2 * F * Din + 2 * C)
    weight_bytes = 4 * (2 * F * Din * H + H + n_hidden * (H * H + H) + H * C + C)
    bytes_accessed = 4 * padded_N * (F * Din + 1 + C) + weight_bytes
    cost = pl.CostEstimate(flops=flops, transcendentals=transcendentals,
                           bytes_accessed=bytes_accessed)

    kernel = _make_nerf_kernel(n_hidden, C)

    out2d = pl.pallas_call(
        kernel,
        out_shape=out_shape,
        grid_spec=pltpu.PrefetchScalarGridSpec(
            num_scalar_prefetch=0,
            grid=grid,
            in_specs=in_specs,
            out_specs=out_specs,
        ),
        compiler_params=pltpu.CompilerParams(
            dimension_semantics=("parallel",)),   # megacore-shard rows on v7x
        cost_estimate=cost,
    )(*operands)

    out2d = out2d[:, :N]
    rgb = out2d[:C - 1, :].T.reshape(R, S, C - 1)
    sigma = out2d[C - 1, :].reshape(R, S)
    return rgb, sigma


def init_params(key, in_features, max_freq, num_freqs, hidden_features,
                hidden_layers, out_features):
    """Deterministic synthetic parameter init (shapes match the PyTorch module)."""
    freqs = 2.0 ** jnp.linspace(0.0, float(max_freq), num_freqs)  # (F,)
    enc_dim = 2 * num_freqs * in_features
    keys = jax.random.split(key, 2 * (hidden_layers + 1))

    def lin(kw, kb, fan_in, fan_out):
        bound = 1.0 / jnp.sqrt(float(fan_in))
        w = jax.random.uniform(kw, (fan_in, fan_out), jnp.float32, -bound, bound)
        b = jax.random.uniform(kb, (1, fan_out), jnp.float32, -bound, bound)
        return w, b

    w0, b0 = lin(keys[0], keys[1], enc_dim, hidden_features)
    half = num_freqs * in_features
    w0_sin, w0_cos = w0[:half], w0[half:]

    hidden = []
    k = 2
    for _ in range(hidden_layers - 1):
        hidden.append(lin(keys[k], keys[k + 1], hidden_features, hidden_features))
        k += 2
    w_out, b_out = lin(keys[k], keys[k + 1], hidden_features, out_features)

    return {
        "freqs": freqs,
        "w0_sin": w0_sin, "w0_cos": w0_cos, "b0": b0,
        "hidden": hidden, "w_out": w_out, "b_out": b_out,
    }


def simple_nerf_reference(x, params):
    """Pure-JAX reference mirroring the PyTorch forward."""
    freqs = params["freqs"]
    x_proj = x[..., None, :] * freqs[:, None]                    # (R,S,F,in)
    x_proj = x_proj.reshape(*x.shape[:-1], -1)                   # (R,S,F*in)
    enc = jnp.concatenate([jnp.sin(x_proj), jnp.cos(x_proj)], axis=-1)
    w0 = jnp.concatenate([params["w0_sin"], params["w0_cos"]], axis=0)
    h = jax.nn.relu(enc @ w0 + params["b0"][0])
    for w, b in params["hidden"]:
        h = jax.nn.relu(h @ w + b[0])
    out = h @ params["w_out"] + params["b_out"][0]
    return jax.nn.sigmoid(out[..., :-1]), jax.nn.softplus(out[..., -1])


if __name__ == "__main__":
    # Small config consistent with the module (in_features=3, rgb+sigma out=4).
    # num_samples=40 makes N=160 (not a multiple of 128) to exercise the padded tail.
    num_rays, num_samples = 4, 40
    in_features = 3
    max_freq, num_freqs = 4, 4
    hidden_features = 32
    hidden_layers = 3
    out_features = 4

    key = jax.random.PRNGKey(0)
    kx, kp = jax.random.split(key)
    x = jax.random.uniform(kx, (num_rays, num_samples, in_features),
                           jnp.float32, -1.0, 1.0)
    params = init_params(kp, in_features, max_freq, num_freqs,
                         hidden_features, hidden_layers, out_features)

    rgb, sigma = simple_nerf_pallas(x, params, tile_n=1024)
    rgb = jax.block_until_ready(rgb)
    sigma = jax.block_until_ready(sigma)

    rgb_ref, sigma_ref = simple_nerf_reference(x, params)
    assert rgb.shape == (num_rays, num_samples, out_features - 1)
    assert sigma.shape == (num_rays, num_samples)
    assert jnp.allclose(rgb, rgb_ref, atol=2e-5, rtol=2e-5)
    assert jnp.allclose(sigma, sigma_ref, atol=2e-5, rtol=2e-5)

    print("KERNEL_OK")
</pallas_src>

<mosaic_0001>
module attributes {stable_mosaic.version = 11 : i64} {
  func.func @kernel(%arg0: i32, %arg1: memref<12x256xf32, #tpu.memory_space<vmem>>, %arg2: memref<12x1xf32, #tpu.memory_space<vmem>>, %arg3: memref<32x12xf32, #tpu.memory_space<vmem>>, %arg4: memref<32x12xf32, #tpu.memory_space<vmem>>, %arg5: memref<32x1xf32, #tpu.memory_space<vmem>>, %arg6: memref<32x32xf32, #tpu.memory_space<vmem>>, %arg7: memref<32x1xf32, #tpu.memory_space<vmem>>, %arg8: memref<32x32xf32, #tpu.memory_space<vmem>>, %arg9: memref<32x1xf32, #tpu.memory_space<vmem>>, %arg10: memref<4x32xf32, #tpu.memory_space<vmem>>, %arg11: memref<4x1xf32, #tpu.memory_space<vmem>>, %arg12: memref<4x256xf32, #tpu.memory_space<vmem>>) attributes {dimension_semantics = [#tpu.dimension_semantics<parallel>], iteration_bounds = array<i64: 1>, scalar_prefetch = 0 : i64, scratch_operands = 0 : i64, tpu.core_type = #tpu.core_type<tc>, window_params = [{transform_indices = @transform_0, window_bounds = array<i64: 12, 256>}, {pipeline_mode = #tpu.pipeline_mode<synchronous>, transform_indices = @transform_1, window_bounds = array<i64: 12, 1>}, {pipeline_mode = #tpu.pipeline_mode<synchronous>, transform_indices = @transform_2, window_bounds = array<i64: 32, 12>}, {pipeline_mode = #tpu.pipeline_mode<synchronous>, transform_indices = @transform_3, window_bounds = array<i64: 32, 12>}, {pipeline_mode = #tpu.pipeline_mode<synchronous>, transform_indices = @transform_4, window_bounds = array<i64: 32, 1>}, {pipeline_mode = #tpu.pipeline_mode<synchronous>, transform_indices = @transform_5, window_bounds = array<i64: 32, 32>}, {pipeline_mode = #tpu.pipeline_mode<synchronous>, transform_indices = @transform_6, window_bounds = array<i64: 32, 1>}, {pipeline_mode = #tpu.pipeline_mode<synchronous>, transform_indices = @transform_7, window_bounds = array<i64: 32, 32>}, {pipeline_mode = #tpu.pipeline_mode<synchronous>, transform_indices = @transform_8, window_bounds = array<i64: 32, 1>}, {pipeline_mode = #tpu.pipeline_mode<synchronous>, transform_indices = @transform_9, window_bounds = array<i64: 4, 32>}, {pipeline_mode = #tpu.pipeline_mode<synchronous>, transform_indices = @transform_10, window_bounds = array<i64: 4, 1>}, {transform_indices = @transform_11, window_bounds = array<i64: 4, 256>}]} {
    %c0 = arith.constant 0 : index
    %c0_0 = arith.constant 0 : index
    %0 = vector.load %arg1[%c0, %c0_0] : memref<12x256xf32, #tpu.memory_space<vmem>>, vector<12x256xf32>
    %c0_1 = arith.constant 0 : index
    %c0_2 = arith.constant 0 : index
    %1 = vector.load %arg2[%c0_1, %c0_2] : memref<12x1xf32, #tpu.memory_space<vmem>>, vector<12x1xf32>
    %2 = vector.broadcast %1 : vector<12x1xf32> to vector<12x256xf32>
    %3 = arith.mulf %0, %2 : vector<12x256xf32>
    %4 = math.sin %3 : vector<12x256xf32>
    %5 = math.cos %3 : vector<12x256xf32>
    %c0_3 = arith.constant 0 : index
    %c0_4 = arith.constant 0 : index
    %6 = vector.load %arg3[%c0_3, %c0_4] : memref<32x12xf32, #tpu.memory_space<vmem>>, vector<32x12xf32>
    %cst = arith.constant dense<0.000000e+00> : vector<32x256xf32>
    %7 = tpu.matmul %6, %4, %cst {dimension_numbers = #tpu.dot_dimension_numbers<[1], [0], [0], [1], [0, 0, 1, 1], [], []>} : vector<32x12xf32>, vector<12x256xf32>, vector<32x256xf32> -> vector<32x256xf32>
    %c0_5 = arith.constant 0 : index
    %c0_6 = arith.constant 0 : index
    %8 = vector.load %arg4[%c0_5, %c0_6] : memref<32x12xf32, #tpu.memory_space<vmem>>, vector<32x12xf32>
    %cst_7 = arith.constant dense<0.000000e+00> : vector<32x256xf32>
    %9 = tpu.matmul %8, %5, %cst_7 {dimension_numbers = #tpu.dot_dimension_numbers<[1], [0], [0], [1], [0, 0, 1, 1], [], []>} : vector<32x12xf32>, vector<12x256xf32>, vector<32x256xf32> -> vector<32x256xf32>
    %10 = arith.addf %7, %9 : vector<32x256xf32>
    %c0_8 = arith.constant 0 : index
    %c0_9 = arith.constant 0 : index
    %11 = vector.load %arg5[%c0_8, %c0_9] : memref<32x1xf32, #tpu.memory_space<vmem>>, vector<32x1xf32>
    %12 = vector.broadcast %11 : vector<32x1xf32> to vector<32x256xf32>
    %13 = arith.addf %10, %12 : vector<32x256xf32>
    %cst_10 = arith.constant 0.000000e+00 : f32
    %14 = vector.broadcast %cst_10 : f32 to vector<32x256xf32>
    %15 = arith.maximumf %13, %14 : vector<32x256xf32>
    %c0_11 = arith.constant 0 : index
    %c0_12 = arith.constant 0 : index
    %16 = vector.load %arg6[%c0_11, %c0_12] : memref<32x32xf32, #tpu.memory_space<vmem>>, vector<32x32xf32>
    %cst_13 = arith.constant dense<0.000000e+00> : vector<32x256xf32>
    %17 = tpu.matmul %16, %15, %cst_13 {dimension_numbers = #tpu.dot_dimension_numbers<[1], [0], [0], [1], [0, 0, 1, 1], [], []>} : vector<32x32xf32>, vector<32x256xf32>, vector<32x256xf32> -> vector<32x256xf32>
    %c0_14 = arith.constant 0 : index
    %c0_15 = arith.constant 0 : index
    %18 = vector.load %arg7[%c0_14, %c0_15] : memref<32x1xf32, #tpu.memory_space<vmem>>, vector<32x1xf32>
    %19 = vector.broadcast %18 : vector<32x1xf32> to vector<32x256xf32>
    %20 = arith.addf %17, %19 : vector<32x256xf32>
    %cst_16 = arith.constant 0.000000e+00 : f32
    %21 = vector.broadcast %cst_16 : f32 to vector<32x256xf32>
    %22 = arith.maximumf %20, %21 : vector<32x256xf32>
    %c0_17 = arith.constant 0 : index
    %c0_18 = arith.constant 0 : index
    %23 = vector.load %arg8[%c0_17, %c0_18] : memref<32x32xf32, #tpu.memory_space<vmem>>, vector<32x32xf32>
    %cst_19 = arith.constant dense<0.000000e+00> : vector<32x256xf32>
    %24 = tpu.matmul %23, %22, %cst_19 {dimension_numbers = #tpu.dot_dimension_numbers<[1], [0], [0], [1], [0, 0, 1, 1], [], []>} : vector<32x32xf32>, vector<32x256xf32>, vector<32x256xf32> -> vector<32x256xf32>
    %c0_20 = arith.constant 0 : index
    %c0_21 = arith.constant 0 : index
    %25 = vector.load %arg9[%c0_20, %c0_21] : memref<32x1xf32, #tpu.memory_space<vmem>>, vector<32x1xf32>
    %26 = vector.broadcast %25 : vector<32x1xf32> to vector<32x256xf32>
    %27 = arith.addf %24, %26 : vector<32x256xf32>
    %cst_22 = arith.constant 0.000000e+00 : f32
    %28 = vector.broadcast %cst_22 : f32 to vector<32x256xf32>
    %29 = arith.maximumf %27, %28 : vector<32x256xf32>
    %c0_23 = arith.constant 0 : index
    %c0_24 = arith.constant 0 : index
    %30 = vector.load %arg10[%c0_23, %c0_24] : memref<4x32xf32, #tpu.memory_space<vmem>>, vector<4x32xf32>
    %cst_25 = arith.constant dense<0.000000e+00> : vector<4x256xf32>
    %31 = tpu.matmul %30, %29, %cst_25 {dimension_numbers = #tpu.dot_dimension_numbers<[1], [0], [0], [1], [0, 0, 1, 1], [], []>} : vector<4x32xf32>, vector<32x256xf32>, vector<4x256xf32> -> vector<4x256xf32>
    %c0_26 = arith.constant 0 : index
    %c0_27 = arith.constant 0 : index
    %32 = vector.load %arg11[%c0_26, %c0_27] : memref<4x1xf32, #tpu.memory_space<vmem>>, vector<4x1xf32>
    %33 = vector.broadcast %32 : vector<4x1xf32> to vector<4x256xf32>
    %34 = arith.addf %31, %33 : vector<4x256xf32>
    %35 = tpu.iota {dimensions = array<i32: 0>} : vector<4x256xi32>
    %c3_i32 = arith.constant 3 : i32
    %36 = vector.broadcast %c3_i32 : i32 to vector<4x256xi32>
    %37 = arith.cmpi slt, %35, %36 : vector<4x256xi32>
    %38 = arith.negf %34 : vector<4x256xf32>
    %39 = math.exp %38 : vector<4x256xf32>
    %cst_28 = arith.constant 1.000000e+00 : f32
    %40 = vector.broadcast %cst_28 : f32 to vector<4x256xf32>
    %41 = arith.addf %40, %39 : vector<4x256xf32>
    %42 = arith.divf %40, %41 : vector<4x256xf32>
    %cst_29 = arith.constant 0.000000e+00 : f32
    %43 = vector.broadcast %cst_29 : f32 to vector<4x256xf32>
    %44 = arith.maximumf %34, %43 : vector<4x256xf32>
    %45 = vector.broadcast %cst_29 : f32 to vector<4x256xf32>
    %46 = arith.subf %34, %45 : vector<4x256xf32>
    %47 = arith.cmpf one, %46, %46 : vector<4x256xf32>
    %48 = vector.broadcast %cst_29 : f32 to vector<4x256xf32>
    %49 = arith.addf %34, %48 : vector<4x256xf32>
    %50 = math.absf %46 : vector<4x256xf32>
    %cst_30 = arith.constant 0.000000e+00 : f32
    %51 = vector.broadcast %cst_30 : f32 to vector<4x256xf32>
    %52 = arith.subf %51, %50 : vector<4x256xf32>
    %53 = math.exp %52 : vector<4x256xf32>
    %54 = math.log1p %53 : vector<4x256xf32>
    %55 = arith.addf %44, %54 : vector<4x256xf32>
    %56 = arith.select %47, %49, %55 : vector<4x256xi1>, vector<4x256xf32>
    %57 = arith.select %37, %42, %56 : vector<4x256xi1>, vector<4x256xf32>
    %c0_31 = arith.constant 0 : index
    %c0_32 = arith.constant 0 : index
    %58 = vector.load %arg12[%c0_31, %c0_32] : memref<4x256xf32, #tpu.memory_space<vmem>>, vector<4x256xf32>
    tpu.vector_store %arg12[%c0_31, %c0_32], %57 {strides = array<i32>} : memref<4x256xf32, #tpu.memory_space<vmem>>, vector<4x256xf32>,
    return
  }
  func.func @transform_0(%arg0: i32) -> (i32, i32) {
    %c0_i32 = arith.constant 0 : i32
    %c0_i32_0 = arith.constant 0 : i32
    return %c0_i32, %arg0 : i32, i32
  }
  func.func @transform_1(%arg0: i32) -> (i32, i32) {
    %c0_i32 = arith.constant 0 : i32
    %c0_i32_0 = arith.constant 0 : i32
    %c0_i32_1 = arith.constant 0 : i32
    return %c0_i32, %c0_i32_0 : i32, i32
  }
  func.func @transform_2(%arg0: i32) -> (i32, i32) {
    %c0_i32 = arith.constant 0 : i32
    %c0_i32_0 = arith.constant 0 : i32
    %c0_i32_1 = arith.constant 0 : i32
    return %c0_i32, %c0_i32_0 : i32, i32
  }
  func.func @transform_3(%arg0: i32) -> (i32, i32) {
    %c0_i32 = arith.constant 0 : i32
    %c0_i32_0 = arith.constant 0 : i32
    %c0_i32_1 = arith.constant 0 : i32
    return %c0_i32, %c0_i32_0 : i32, i32
  }
  func.func @transform_4(%arg0: i32) -> (i32, i32) {
    %c0_i32 = arith.constant 0 : i32
    %c0_i32_0 = arith.constant 0 : i32
    %c0_i32_1 = arith.constant 0 : i32
    return %c0_i32, %c0_i32_0 : i32, i32
  }
  func.func @transform_5(%arg0: i32) -> (i32, i32) {
    %c0_i32 = arith.constant 0 : i32
    %c0_i32_0 = arith.constant 0 : i32
    %c0_i32_1 = arith.constant 0 : i32
    return %c0_i32, %c0_i32_0 : i32, i32
  }
  func.func @transform_6(%arg0: i32) -> (i32, i32) {
    %c0_i32 = arith.constant 0 : i32
    %c0_i32_0 = arith.constant 0 : i32
    %c0_i32_1 = arith.constant 0 : i32
    return %c0_i32, %c0_i32_0 : i32, i32
  }
  func.func @transform_7(%arg0: i32) -> (i32, i32) {
    %c0_i32 = arith.constant 0 : i32
    %c0_i32_0 = arith.constant 0 : i32
    %c0_i32_1 = arith.constant 0 : i32
    return %c0_i32, %c0_i32_0 : i32, i32
  }
  func.func @transform_8(%arg0: i32) -> (i32, i32) {
    %c0_i32 = arith.constant 0 : i32
    %c0_i32_0 = arith.constant 0 : i32
    %c0_i32_1 = arith.constant 0 : i32
    return %c0_i32, %c0_i32_0 : i32, i32
  }
  func.func @transform_9(%arg0: i32) -> (i32, i32) {
    %c0_i32 = arith.constant 0 : i32
    %c0_i32_0 = arith.constant 0 : i32
    %c0_i32_1 = arith.constant 0 : i32
    return %c0_i32, %c0_i32_0 : i32, i32
  }
  func.func @transform_10(%arg0: i32) -> (i32, i32) {
    %c0_i32 = arith.constant 0 : i32
    %c0_i32_0 = arith.constant 0 : i32
    %c0_i32_1 = arith.constant 0 : i32
    return %c0_i32, %c0_i32_0 : i32, i32
  }
  func.func @transform_11(%arg0: i32) -> (i32, i32) {
    %c0_i32 = arith.constant 0 : i32
    %c0_i32_0 = arith.constant 0 : i32
    return %c0_i32, %arg0 : i32, i32
  }
}

</mosaic_0001>

<bundles_post_ra>
// kernel: tpu_custom_call.1
= control target key start
LH: loop header
LB: loop body
LE: loop exit
PB: predicated region body
PF: predicated region fallthrough
CT: control target
= control target key end

     0   :  { %v1978_v1 = vmov 0   ;;  %s2772_s0 = inlined_call_operand.vmem [shape: f32[12,256], index: 0, kind: input, shape index: {}]   ;;  %s2773_s1 = inlined_call_operand.vmem [shape: f32[12,1], index: 1, kind: input, shape index: {}]   ;;  %s2774_s2 = inlined_call_operand.vmem [shape: f32[32,12], index: 2, kind: input, shape index: {}]   ;;  %s2775_s3 = inlined_call_operand.vmem [shape: f32[32,12], index: 3, kind: input, shape index: {}]   ;;  %s2776_s4 = inlined_call_operand.vmem [shape: f32[32,1], index: 4, kind: input, shape index: {}]   ;;  %s2777_s5 = inlined_call_operand.vmem [shape: f32[32,32], index: 5, kind: input, shape index: {}]   ;;  %s2778_s6 = inlined_call_operand.vmem [shape: f32[32,1], index: 6, kind: input, shape index: {}]   ;;  %s2779_s7 = inlined_call_operand.vmem [shape: f32[32,32], index: 7, kind: input, shape index: {}]   ;;  %s2780_s8 = inlined_call_operand.vmem [shape: f32[32,1], index: 8, kind: input, shape index: {}]   ;;  %s2781_s9 = inlined_call_operand.vmem [shape: f32[4,32], index: 9, kind: input, shape index: {}]   ;;  %s2782_s10 = inlined_call_operand.vmem [shape: f32[4,1], index: 10, kind: input, shape index: {}]   ;;  %s2783_s11 = inlined_call_operand.hbm [shape: f32[4,256], index: 11, kind: output, shape index: {}]  }
   0x1   :  { %v44_v0 = vld [vmem:[%s2773_s1 + $0x8] sm:$0xf]  ;;  %1933 = vset.pattern.permute.xlu0 %v1978_v1  ;;  %1934 = vset.pattern.permute.xlu1 %v1978_v1 }
   0x2   :  { %16 = vsyncpa [#allocation3], 0  ;;  %52 = vperm.xlu0 %1933, %v44_v0   ;;  %1935 = vset.pattern.permute.xlu2 %v1978_v1  ;;  %v43_v2 = vld [vmem:[%s2773_s1] sm:$0xff]  ;;  %v1504_v3 = vld [vmem:[%s2778_s6 + $0x18] sm:$0xff]  ;;  %v1979_v43 = vmov 920167782  }
   0x3   :  { %v1501_v4 = vld [vmem:[%s2778_s6] sm:$0xff]  ;;  %v1609_v5 = vld [vmem:[%s2780_s8 + $0x8] sm:$0xff]  ;;  %v41_v6 = vld [vmem:[%s2772_s0 + $0x10] sm:$0xf]  ;;  %v1980_v48 = vmov 2102212464  }
   0x4   :  { %v42_v7 = vld [vmem:[%s2772_s0 + $0x18] sm:$0xf]  ;;  %v39_v15 = vld [vmem:[%s2772_s0] sm:$0xff]  ;;  %v40_v16 = vld [vmem:[%s2772_s0 + $0x8] sm:$0xff]  ;;  %v1981_v50 = vmov 1326507024  }
   0x5   :  { %v1982_v53 = vmov 2475754826   ;;  %v1983_v60 = vmov 683565275   ;;  %v1984_v62 = vmov 2131351028  }
   0x6   :  { %s1852_s19 = sshll.u32 %s2783_s11, 4  ;;  %s1853_s19 = int_to_ptr.hbm [resolvable:$true] %s1852_s19 }
   0xa   :  { %47 = vperm.xlu0 %1933, %v43_v2  }
  0x12   :  { %1522 = vperm.xlu0 %1933, %v1504_v3  }
  0x1a   :  { %1507 = vperm.xlu0 %1933, %v1501_v4  }
  0x22   :  { %1619 = vperm.xlu0 %1933, %v1609_v5  }
  0x74   :  { %v53_v8 = vpop.permute.xlu0 %52 }
  0x75   :  { %v2070_v9 = vmul.f32 %v53_v8, %v41_v6  ;;  %v2072_v10 = vmul.f32 %v53_v8, %v42_v7 }
  0x77   :  { %v372_v11 = vand.u32 2139095040, %v2070_v9  ;;  %v527_v12 = vand.u32 2139095040, %v2072_v10  ;;  %v369_v19 = vand.u32 2147483647, %v2070_v9  ;;  %v524_v21 = vand.u32 2147483647, %v2072_v10 }
  0x79   :  { %v373_v13 = vshrl.u32 %v372_v11, 23  ;;  %v528_v14 = vshrl.u32 %v527_v12, 23  ;;  %v376_v27 = vand.u32 8388607, %v369_v19  ;;  %v531_v32 = vand.u32 8388607, %v524_v21 }
  0x7b   :  { %v1867_v17 = vadd.s32 4294967169, %v373_v13  ;;  %v1870_v18 = vadd.s32 4294967169, %v528_v14  ;;  %v377_v35 = vor.u32 8388608, %v376_v27  ;;  %v532_v39 = vor.u32 8388608, %v531_v32 }
  0x7c   :  { %v48_v20 = vpop.permute.xlu0 %47 }
  0x7d   :  { %v379_v22 = vadd.s32 1, %v1867_v17  ;;  %v534_v23 = vadd.s32 1, %v1870_v18  ;;  %v2084_v24 = vmul.f32 %v48_v20, %v39_v15  ;;  %v2086_v25 = vmul.f32 %v48_v20, %v40_v16 }
  0x7e   :  { %v2101_v42 = vshll.u32 %v377_v35, 8  ;;  %v2107_v47 = vshll.u32 %v532_v39, 8 }
  0x7f   :  { %vm380_vm0 = vcmp.gt.s32.totalorder %v379_v22, 0  ;;  %vm535_vm1 = vcmp.gt.s32.totalorder %v534_v23, 0  ;;  %v217_v26 = vand.u32 2139095040, %v2086_v25  ;;  %v62_v31 = vand.u32 2139095040, %v2084_v24 }
  0x80   :  { %v381_v28 = vsel %vm380_vm0, %v379_v22, 0  ;;  %v536_v29 = vsel %vm535_vm1, %v534_v23, 0  ;;  %v418_v58 = vand.u32 65535, %v2101_v42 }
  0x81   :  { %v383_v30 = vand.u32 31, %v381_v28  ;;  %v218_v33 = vshrl.u32 %v217_v26, 23  ;;  %v2094_v34 = vand.u32 31, %v536_v29  ;;  %v63_v37 = vshrl.u32 %v62_v31, 23 }
  0x82   :  { %v2105_v45 = vshrl.u32 %v381_v28, 5  ;;  %v2142_v16 = vshrl.u32 %v536_v29, 5  ;;  %v419_v29 = vshrl.u32 %v2101_v42, 16 }
  0x83   :  { %v2096_v36 = vsub.s32 32, %v383_v30  ;;  %v1864_v38 = vadd.s32 4294967169, %v218_v33  ;;  %v2099_v40 = vsub.s32 32, %v2094_v34  ;;  %v1861_v46 = vadd.s32 4294967169, %v63_v37 }
  0x84   :  { %v395_v49 = vshll.u32 %v1980_v48, %v383_v30  ;;  %v398_v55 = vshll.u32 %v1979_v43, %v383_v30  ;;  %v386_v61 = vshll.u32 %v1983_v60, %v383_v30  ;;  %v389_v4 = vshll.u32 %v1982_v53, %v383_v30 }
  0x85   :  { %v224_v41 = vadd.s32 1, %v1864_v38  ;;  %v396_v44 = vshrl.u32 %v1979_v43, %v2096_v36  ;;  %v399_v51 = vshrl.u32 %v1981_v50, %v2096_v36  ;;  %v387_v54 = vshrl.u32 %v1982_v53, %v2096_v36 }
  0x86   :  { %v551_v56 = vshrl.u32 %v1979_v43, %v2099_v40  ;;  %v390_v63 = vshrl.u32 %v1984_v62, %v2096_v36  ;;  %v393_v0 = vshrl.u32 %v1980_v48, %v2096_v36  ;;  %v554_v2 = vshrl.u32 %v1981_v50, %v2099_v40 }
  0x87   :  { %vm225_vm2 = vcmp.gt.s32.totalorder %v224_v41, 0  ;;  %v397_v59 = vor.u32 %v396_v44, %v395_v49  ;;  %v69_v3 = vadd.s32 1, %v1861_v46  ;;  %v392_v5 = vshll.u32 %v1984_v62, %v383_v30 }
  0x88   :  { %v2112_v52 = vsel %vm225_vm2, %v224_v41, 0  ;;  %v400_v6 = vor.u32 %v399_v51, %v398_v55  ;;  %vm404_vm3 = vcmp.lt.s32.totalorder %v2105_v45, 4  ;;  %v388_v8 = vor.u32 %v387_v54, %v386_v61 }
  0x89   :  { %v2120_v57 = vand.u32 31, %v2112_v52  ;;  %v550_v11 = vshll.u32 %v1980_v48, %v2094_v34  ;;  %v553_v12 = vshll.u32 %v1979_v43, %v2094_v34  ;;  %v391_v13 = vor.u32 %v390_v63, %v389_v4 }
  0x8a   :  { %v394_v14 = vor.u32 %v393_v0, %v392_v5  ;;  %v410_v15 = vsel %vm404_vm3, %v397_v59, 920167782  ;;  %vm70_vm4 = vcmp.gt.s32.totalorder %v69_v3, 0  ;;  %vm401_vm5 = vcmp.lt.s32.totalorder %v2105_v45, 1 }
  0x8b   :  { %v2134_v7 = vsub.s32 32, %v2120_v57  ;;  %v2146_v17 = vshll.u32 %v1979_v43, %v2120_v57  ;;  %v2152_v20 = vor.u32 %v551_v56, %v550_v11  ;;  %v555_v22 = vor.u32 %v554_v2, %v553_v12 }
  0x8c   :  { %v414_v23 = vsel %vm404_vm3, %v400_v6, 1326507024  ;;  %vm403_vm6 = vcmp.lt.s32.totalorder %v2105_v45, 3  ;;  %v409_v27 = vsel %vm401_vm5, %v388_v8, %v391_v13  ;;  %vm402_vm7 = vcmp.lt.s32.totalorder %v2105_v45, 2 }
  0x8d   :  { %v2150_v18 = vshrl.u32 %v1981_v50, %v2134_v7  ;;  %v411_v28 = vsel %vm403_vm6, %v394_v14, %v410_v15  ;;  %v2167_v30 = vand.u32 65535, %v2107_v47  ;;  %vm559_vm8 = vcmp.lt.s32.totalorder %v2142_v16, 4 }
  0x8e   :  { %v2170_v31 = vsel %vm70_vm4, %v69_v3, 0  ;;  %v406_v32 = vsel %vm404_vm3, %v394_v14, 2102212464  ;;  %v412_v33 = vsel %vm402_vm7, %v409_v27, %v411_v28  ;;  %v413_v35 = vsel %vm401_vm5, %v391_v13, %v394_v14 }
  0x8f   :  { %v245_v26 = vor.u32 %v2150_v18, %v2146_v17  ;;  %v415_v37 = vsel %vm403_vm6, %v397_v59, %v414_v23  ;;  %v442_v38 = vand.u32 65535, %v412_v33  ;;  %v443_v39 = vshrl.u32 %v412_v33, 16 }
  0x90   :  { %v565_v41 = vsel %vm559_vm8, %v2152_v20, 920167782  ;;  %v569_v44 = vsel %vm559_vm8, %v555_v22, 1326507024  ;;  %v385_v46 = vshrl.u32 %v1983_v60, %v2096_v36  ;;  %v416_v49 = vsel %vm402_vm7, %v413_v35, %v415_v37 }
  0x91   :  { %v2190_v51 = vand.u32 31, %v2170_v31  ;;  %v420_v54 = vand.u32 65535, %v416_v49  ;;  %v421_v55 = vshrl.u32 %v416_v49, 16  ;;  %v445_v56 = vmul.u32 %v443_v39, %v418_v58 }
  0x92   :  { %v405_v59 = vsel %vm401_vm5, %v385_v46, %v388_v8  ;;  %v407_v61 = vsel %vm403_vm6, %v391_v13, %v406_v32  ;;  %v446_v63 = vmul.u32 %v442_v38, %v419_v29  ;;  %v541_v0 = vshll.u32 %v1983_v60, %v2094_v34 }
  0x93   :  { %v423_v36 = vmul.u32 %v421_v55, %v418_v58  ;;  %v424_v2 = vmul.u32 %v420_v54, %v419_v29  ;;  %v444_v3 = vmul.u32 %v442_v38, %v418_v58  ;;  %v447_v4 = vmul.u32 %v443_v39, %v419_v29 }
  0x94   :  { %v422_v5 = vmul.u32 %v420_v54, %v418_v58  ;;  %v448_v6 = vshll.u32 %v445_v56, 16  ;;  %v542_v11 = vshrl.u32 %v1982_v53, %v2099_v40  ;;  %v544_v12 = vshll.u32 %v1982_v53, %v2094_v34 }
  0x95   :  { %v425_v8 = vmul.u32 %v421_v55, %v419_v29  ;;  %v426_v14 = vshll.u32 %v423_v36, 16  ;;  %v449_v15 = vshrl.u32 %v445_v56, 16  ;;  %v450_v13 = vshll.u32 %v446_v63, 16 }
  0x96   :  { %v451_v22 = vshrl.u32 %v446_v63, 16  ;;  %vm452_vm9 = vc.u32 %v444_v3, %v448_v6  ;;  %v454_v23 = vadd.s32 %v448_v6, %v444_v3  ;;  %v545_v27 = vshrl.u32 %v1984_v62, %v2099_v40 }
  0x97   :  { %v428_v28 = vshll.u32 %v424_v2, 16  ;;  %vm430_vm10 = vc.u32 %v422_v5, %v426_v14  ;;  %v432_v58 = vadd.s32 %v426_v14, %v422_v5  ;;  %v453_v32 = vsel %vm452_vm9, 1, %v1978_v1 }
  0x98   :  { %v431_v33 = vsel %vm430_vm10, 1, %v1978_v1  ;;  %v455_v35 = vadd.s32 %v453_v32, %v447_v4  ;;  %vm456_vm11 = vc.u32 %v454_v23, %v450_v13  ;;  %v2206_v37 = vor.u32 %v542_v11, %v541_v0 }
  0x99   :  { %v433_v29 = vadd.s32 %v431_v33, %v425_v8  ;;  %vm434_vm12 = vc.u32 %v432_v58, %v428_v28  ;;  %v457_v38 = vsel %vm456_vm11, 1, %v1978_v1  ;;  %v2209_v39 = vor.u32 %v545_v27, %v544_v12 }
  0x9a   :  { %v435_v46 = vsel %vm434_vm12, 1, %v1978_v1  ;;  %v459_v49 = vadd.s32 %v457_v38, %v455_v35  ;;  %v547_v54 = vshll.u32 %v1984_v62, %v2094_v34  ;;  %v548_v55 = vshrl.u32 %v1980_v48, %v2099_v40 }
  0x9b   :  { %v427_v56 = vshrl.u32 %v423_v36, 16  ;;  %v437_v63 = vadd.s32 %v435_v46, %v433_v29  ;;  %vm556_vm13 = vcmp.lt.s32.totalorder %v2142_v16, 1  ;;  %vm558_vm14 = vcmp.lt.s32.totalorder %v2142_v16, 3 }
  0x9c   :  { %v460_v0 = vadd.s32 %v459_v49, %v449_v15  ;;  %v549_v3 = vor.u32 %v548_v55, %v547_v54  ;;  %v564_v4 = vsel %vm556_vm13, %v2206_v37, %v2209_v39  ;;  %v570_v34 = vsel %vm558_vm14, %v2152_v20, %v569_v44 }
  0x9d   :  { %v408_v5 = vsel %vm402_vm7, %v405_v59, %v407_v61  ;;  %v429_v36 = vshrl.u32 %v424_v2, 16  ;;  %v438_v6 = vadd.s32 %v437_v63, %v427_v56  ;;  %v574_v11 = vshrl.u32 %v2107_v47, 16 }
  0x9e   :  { %v461_v12 = vadd.s32 %v460_v0, %v451_v22  ;;  %vm557_vm15 = vcmp.lt.s32.totalorder %v2142_v16, 2  ;;  %v566_v8 = vsel %vm558_vm14, %v549_v3, %v565_v41  ;;  %v568_v14 = vsel %vm556_vm13, %v2209_v39, %v549_v3 }
  0x9f   :  { %v2234_v15 = vadd.s32 %v438_v6, %v429_v36  ;;  %v2236_v20 = vadd.s32 %v454_v23, %v450_v13  ;;  %v567_v45 = vsel %vm557_vm15, %v564_v4, %v566_v8  ;;  %v571_v44 = vsel %vm557_vm15, %v568_v14, %v570_v34 }
  0xa0   :  { %v2243_v59 = vsub.s32 32, %v2190_v51  ;;  %v465_v61 = vadd.s32 1, %v461_v12  ;;  %v575_v2 = vand.u32 65535, %v571_v44  ;;  %v576_v41 = vshrl.u32 %v571_v44, 16 }
  0xa1   :  { %v462_v22 = vmul.u32 %v2101_v42, %v408_v5  ;;  %vm464_vm0 = vc.u32 %v2234_v15, %v2236_v20  ;;  %v597_v27 = vand.u32 65535, %v567_v45  ;;  %v598_v13 = vshrl.u32 %v567_v45, 16 }
  0xa2   :  { %v2249_v23 = vshrl.u32 %v2170_v31, 5  ;;  %v466_v28 = vsel %vm464_vm0, %v465_v61, %v461_v12  ;;  %v578_v58 = vmul.u32 %v576_v41, %v2167_v30  ;;  %v579_v32 = vmul.u32 %v575_v2, %v574_v11 }
  0xa3   :  { %v85_v33 = vshll.u32 %v1980_v48, %v2190_v51  ;;  %v2255_v35 = vshrl.u32 %v2112_v52, 5  ;;  %v467_v29 = vadd.s32 %v466_v28, %v462_v22  ;;  %v600_v42 = vmul.u32 %v598_v13, %v2167_v30 }
  0xa4   :  { %v86_v38 = vshrl.u32 %v1979_v43, %v2243_v59  ;;  %v561_v31 = vsel %vm559_vm8, %v549_v3, 2102212464  ;;  %v577_v46 = vmul.u32 %v575_v2, %v2167_v30  ;;  %v581_v49 = vshll.u32 %v578_v58, 16 }
  0xa5   :  { %v468_v54 = vadd.s32 536870912, %v467_v29  ;;  %v580_v55 = vmul.u32 %v576_v41, %v574_v11  ;;  %v601_v56 = vmul.u32 %v597_v27, %v574_v11  ;;  %v603_v63 = vshll.u32 %v600_v42, 16 }
  0xa6   :  { %v583_v0 = vshll.u32 %v579_v32, 16  ;;  %vm585_vm1 = vc.u32 %v577_v46, %v581_v49  ;;  %v587_v52 = vadd.s32 %v581_v49, %v577_v46  ;;  %v599_v4 = vmul.u32 %v597_v27, %v2167_v30 }
  0xa7   :  { %v2264_v34 = vshrl.u32 %v468_v54, 30  ;;  %v586_v5 = vsel %vm585_vm1, 1, %v1978_v1  ;;  %v602_v36 = vmul.u32 %v598_v13, %v574_v11  ;;  %v605_v6 = vshll.u32 %v601_v56, 16 }
  0xa8   :  { %v588_v12 = vadd.s32 %v586_v5, %v580_v55  ;;  %vm589_vm2 = vc.u32 %v587_v52, %v583_v0  ;;  %vm607_vm3 = vc.u32 %v599_v4, %v603_v63  ;;  %v609_v3 = vadd.s32 %v603_v63, %v599_v4 }
  0xa9   :  { %v470_v8 = vshll.u32 %v2264_v34, 30  ;;  %v540_v14 = vshrl.u32 %v1983_v60, %v2099_v40  ;;  %v590_v45 = vsel %vm589_vm2, 1, %v1978_v1  ;;  %v608_v44 = vsel %vm607_vm3, 1, %v1978_v1 }
  0xaa   :  { %v582_v30 = vshrl.u32 %v578_v58, 16  ;;  %v592_v61 = vadd.s32 %v590_v45, %v588_v12  ;;  %v610_v2 = vadd.s32 %v608_v44, %v602_v36  ;;  %vm611_vm4 = vc.u32 %v609_v3, %v605_v6 }
  0xab   :  { %v2272_v41 = vsub.s32 %v467_v29, %v470_v8  ;;  %v560_v11 = vsel %vm556_vm13, %v540_v14, %v2206_v37  ;;  %v562_v22 = vsel %vm558_vm14, %v2209_v39, %v561_v31  ;;  %v612_v40 = vsel %vm611_vm4, 1, %v1978_v1 }
  0xac   :  { %v584_v27 = vshrl.u32 %v579_v32, 16  ;;  %v593_v13 = vadd.s32 %v592_v61, %v582_v30  ;;  %v604_v28 = vshrl.u32 %v600_v42, 16  ;;  %v614_v46 = vadd.s32 %v612_v40, %v610_v2 }
  0xad   :  { %v88_v58 = vshll.u32 %v1979_v43, %v2190_v51  ;;  %v89_v29 = vshrl.u32 %v1981_v50, %v2243_v59  ;;  %vm472_vm5 = vcmp.lt.s32.totalorder %v2272_v41, 0  ;;  %v473_v37 = vsub.s32 0, %v2272_v41 }
  0xae   :  { %vm94_vm6 = vcmp.lt.s32.totalorder %v2249_v23, 4  ;;  %vm371_vm7 = vcmp.lt.s32.totalorder %v2070_v9, 0  ;;  %v2289_v39 = vadd.s32 %v593_v13, %v584_v27  ;;  %v606_v32 = vshrl.u32 %v601_v56, 16 }
  0xaf   :  { %v615_v31 = vadd.s32 %v614_v46, %v604_v28  ;;  %v474_v42 = vsel %vm472_vm5, %v473_v37, %v2272_v41  ;;  %v563_v49 = vsel %vm557_vm15, %v560_v11, %v562_v22  ;;  %v2294_v54 = vadd.s32 %v609_v3, %v605_v6 }
  0xb0   :  { %v59_v50 = vand.u32 2147483647, %v2084_v24  ;;  %v87_v55 = vor.u32 %v86_v38, %v85_v33  ;;  %v240_v63 = vshll.u32 %v1980_v48, %v2120_v57  ;;  %v475_v0 = vclz %v474_v42 }
  0xb1   :  { %v616_v52 = vadd.s32 %v615_v31, %v606_v32  ;;  %v90_v4 = vor.u32 %v89_v29, %v88_v58  ;;  %v241_v56 = vshrl.u32 %v1979_v43, %v2134_v7  ;;  %vm619_vm8 = vc.u32 %v2289_v39, %v2294_v54 }
  0xb2   :  { %v80_v16 = vshrl.u32 %v1984_v62, %v2243_v59  ;;  %v1868_v5 = vadd.s32 4294967294, %v475_v0  ;;  %v617_v36 = vmul.u32 %v2107_v47, %v563_v49  ;;  %v83_v33 = vshrl.u32 %v1980_v48, %v2243_v59 }
  0xb3   :  { %v620_v6 = vadd.s32 1, %v616_v52  ;;  %vm249_vm9 = vcmp.lt.s32.totalorder %v2255_v35, 4  ;;  %vm2311_vm10 = vcmp.le.f32.partialorder %v369_v19, 0.7853982  ;;  %v493_v43 = vsub.s32 4, %v2264_v34 }
  0xb4   :  { %v66_v12 = vand.u32 8388607, %v59_v50  ;;  %v79_v47 = vshll.u32 %v1982_v53, %v2190_v51  ;;  %v82_v3 = vshll.u32 %v1984_v62, %v2190_v51  ;;  %v100_v8 = vsel %vm94_vm6, %v87_v55, 920167782 }
  0xb5   :  { %vm1869_vm11 = vcmp.lt.s32.totalorder %v1868_v5, 0  ;;  %v621_v14 = vsel %vm619_vm8, %v620_v6, %v616_v52  ;;  %v77_v19 = vshrl.u32 %v1982_v53, %v2243_v59  ;;  %v104_v2 = vsel %vm94_vm6, %v90_v4, 1326507024 }
  0xb6   :  { %v478_v45 = vsel %vm1869_vm11, 0, %v1868_v5  ;;  %v622_v44 = vadd.s32 %v621_v14, %v617_v36  ;;  %v81_v30 = vor.u32 %v80_v16, %v79_v47  ;;  %v84_v61 = vor.u32 %v83_v33, %v82_v3 }
  0xb7   :  { %v463_v11 = vadd.s32 %v2236_v20, %v2234_v15  ;;  %v479_v22 = vsub.s32 32, %v478_v45  ;;  %v483_v40 = vsub.s32 4294967266, %v478_v45  ;;  %v494_v27 = vsel %vm371_vm7, %v493_v43, %v2264_v34 }
  0xb8   :  { %v623_v13 = vadd.s32 536870912, %v622_v44  ;;  %v67_v28 = vor.u32 8388608, %v66_v12  ;;  %v76_v46 = vshll.u32 %v1983_v60, %v2190_v51  ;;  %v480_v58 = vshll.u32 %v2272_v41, %v478_v45 }
  0xb9   :  { %v481_v29 = vshrl.u32 %v463_v11, %v479_v22  ;;  %v484_v37 = vadd.s32 127, %v483_v40  ;;  %vm91_vm12 = vcmp.lt.s32.totalorder %v2249_v23, 1  ;;  %vm93_vm13 = vcmp.lt.s32.totalorder %v2249_v23, 3 }
  0xba   :  { %v2337_v32 = vshrl.u32 %v623_v13, 30  ;;  %v78_v15 = vor.u32 %v77_v19, %v76_v46  ;;  %v103_v20 = vsel %vm91_vm12, %v81_v30, %v84_v61  ;;  %vm92_vm14 = vcmp.lt.s32.totalorder %v2249_v23, 2 }
  0xbb   :  { %v482_v34 = vor.u32 %v481_v29, %v480_v58  ;;  %v485_v31 = vshll.u32 %v484_v37, 23  ;;  %v105_v51 = vsel %vm93_vm13, %v87_v55, %v104_v2  ;;  %v2345_v41 = vor.u32 %v241_v56, %v240_v63 }
  0xbc   :  { %v625_v42 = vshll.u32 %v2337_v32, 30  ;;  %v106_v49 = vsel %vm92_vm14, %v103_v20, %v105_v51  ;;  %v2350_v0 = vshll.u32 %v67_v28, 8  ;;  %v2357_v52 = vsel %vm249_vm9, %v245_v26, 1326507024 }
  0xbd   :  { %v486_v4 = vor.u32 4788187, %v485_v31  ;;  %v496_v55 = vsel %vm2311_vm10, 0, %v494_v27  ;;  %v111_v63 = vshrl.u32 %v106_v49, 16  ;;  %v99_v16 = vsel %vm91_vm12, %v78_v15, %v81_v30 }
  0xbe   :  { %v2361_v56 = vsub.s32 %v622_v44, %v625_v42  ;;  %v101_v5 = vsel %vm93_vm13, %v84_v61, %v100_v8  ;;  %v110_v36 = vand.u32 65535, %v106_v49  ;;  %v489_v17 = vcvt.s32.f32 %v482_v34 }
  0xbf   :  { %v487_v6 = vand.u32 2147483647, %v486_v4  ;;  %v75_v18 = vshrl.u32 %v1983_v60, %v2243_v59  ;;  %v108_v26 = vand.u32 65535, %v2350_v0  ;;  %v96_v43 = vsel %vm94_vm6, %v84_v61, 2102212464 }
  0xc0   :  { %vm627_vm15 = vcmp.lt.s32.totalorder %v2361_v56, 0  ;;  %v628_v33 = vsub.s32 0, %v2361_v56  ;;  %v2375_v12 = vshrl.u32 %v2350_v0, 16  ;;  %v2377_v3 = vand.u32 3, %v496_v55 }
  0xc1   :  { %v490_v47 = vmul.f32 %v489_v17, %v487_v6  ;;  %vm526_vm0 = vcmp.lt.s32.totalorder %v2072_v10, 0  ;;  %v102_v59 = vsel %vm92_vm14, %v99_v16, %v101_v5  ;;  %v113_v8 = vmul.u32 %v111_v63, %v108_v26 }
  0xc2   :  { %v618_v14 = vadd.s32 %v2294_v54, %v2289_v39  ;;  %v629_v19 = vsel %vm627_vm15, %v628_v33, %v2361_v56  ;;  %v513_v45 = vadd.s32 3, %v496_v55  ;;  %v2386_v44 = vmul.u32 %v110_v36, %v2375_v12 }
  0xc3   :  { %v491_v61 = vxor.u32 2147483648, %v490_v47  ;;  %v630_v2 = vclz %v629_v19  ;;  %v95_v11 = vsel %vm91_vm12, %v75_v18, %v78_v15  ;;  %v97_v22 = vsel %vm93_vm13, %v81_v30, %v96_v43 }
  0xc4   :  { %v648_v40 = vsub.s32 4, %v2337_v32  ;;  %v112_v27 = vmul.u32 %v110_v36, %v108_v26  ;;  %v116_v13 = vshll.u32 %v113_v8, 16  ;;  %v133_v28 = vshrl.u32 %v102_v59, 16 }
  0xc5   :  { %v492_v39 = vsel %vm371_vm7, %v491_v61, %v490_v47  ;;  %v1871_v54 = vadd.s32 4294967294, %v630_v2  ;;  %v115_v46 = vmul.u32 %v111_v63, %v2375_v12  ;;  %v132_v58 = vand.u32 65535, %v102_v59 }
  0xc6   :  { %v2399_v29 = vsel %vm2311_vm10, %v2070_v9, %v492_v39  ;;  %v118_v37 = vshll.u32 %v2386_v44, 16  ;;  %vm120_vm1 = vc.u32 %v112_v27, %v116_v13  ;;  %v122_v30 = vadd.s32 %v116_v13, %v112_v27 }
  0xc7   :  { %v497_v15 = vmul.f32 %v2399_v29, %v2399_v29  ;;  %vm1872_vm2 = vcmp.lt.s32.totalorder %v1871_v54, 0  ;;  %v2404_v20 = vand.u32 3, %v513_v45  ;;  %v121_v34 = vsel %vm120_vm1, 1, %v1978_v1 }
  0xc8   :  { %v633_v31 = vsel %vm1872_vm2, 0, %v1871_v54  ;;  %v123_v51 = vadd.s32 %v121_v34, %v115_v46  ;;  %vm124_vm3 = vc.u32 %v122_v30, %v118_v37  ;;  %v135_v42 = vmul.u32 %v133_v28, %v108_v26 }
  0xc9   :  { %v498_v49 = vmul.f32 -0.001358992, %v497_v15  ;;  %v505_v38 = vmul.f32 -0.00019511016, %v497_v15  ;;  %vm2409_vm4 = vcmp.le.f32.partialorder %v524_v21, 0.7853982  ;;  %v2415_v63 = vsel %vm92_vm14, %v95_v11, %v97_v22 }
  0xca   :  { %v634_v55 = vsub.s32 32, %v633_v31  ;;  %v638_v16 = vsub.s32 4294967266, %v633_v31  ;;  %v649_v5 = vsel %vm526_vm0, %v648_v40, %v2337_v32  ;;  %v125_v36 = vsel %vm124_vm3, 1, %v1978_v1 }
  0xcb   :  { %v136_v6 = vmul.u32 %v132_v58, %v2375_v12  ;;  %v499_v17 = vadd.f32 0.041655596, %v498_v49  ;;  %v506_v18 = vadd.f32 0.008332121, %v505_v38  ;;  %v127_v33 = vadd.s32 %v125_v36, %v123_v51 }
  0xcc   :  { %v636_v21 = vshrl.u32 %v618_v14, %v634_v55  ;;  %v635_v43 = vshll.u32 %v2361_v56, %v633_v31  ;;  %v639_v47 = vadd.s32 127, %v638_v16  ;;  %v134_v59 = vmul.u32 %v132_v58, %v108_v26 }
  0xcd   :  { %v138_v23 = vshll.u32 %v135_v42, 16  ;;  %v500_v19 = vmul.f32 %v499_v17, %v497_v15  ;;  %v507_v45 = vmul.f32 %v506_v18, %v497_v15  ;;  %v117_v61 = vshrl.u32 %v113_v8, 16 }
  0xce   :  { %v140_v2 = vshll.u32 %v136_v6, 16  ;;  %v637_v11 = vor.u32 %v636_v21, %v635_v43  ;;  %v640_v22 = vshll.u32 %v639_v47, 23  ;;  %vm1136_vm6 = vcmp.eq.s32.totalorder %v2377_v3, 2 }
  0xcf   :  { %vm142_vm5 = vc.u32 %v134_v59, %v138_v23  ;;  %v144_v32 = vadd.s32 %v138_v23, %v134_v59  ;;  %v501_v40 = vadd.f32 -0.4999988, %v500_v19  ;;  %v508_v27 = vadd.f32 -0.16666654, %v507_v45 }
  0xd0   :  { %v128_v13 = vadd.s32 %v127_v33, %v117_v61  ;;  %v137_v14 = vmul.u32 %v133_v28, %v2375_v12  ;;  %vm1133_vm7 = vcmp.eq.s32.totalorder %v2377_v3, 0  ;;  %v641_v56 = vor.u32 4788187, %v640_v22 }
  0xd1   :  { %vm516_vm8 = vcmp.eq.s32.totalorder %v2404_v20, 0  ;;  %v119_v26 = vshrl.u32 %v2386_v44, 16  ;;  %v143_v8 = vsel %vm142_vm5, 1, %v1978_v1  ;;  %vm146_vm10 = vc.u32 %v144_v32, %v140_v2 }
  0xd2   :  { %v502_v39 = vmul.f32 %v501_v40, %v497_v15  ;;  %v509_v54 = vmul.f32 %v508_v27, %v497_v15  ;;  %vm1132_vm11 = vcmp.lt.s32.totalorder %v2377_v3, 2  ;;  %vm515_vm12 = vcmp.lt.s32.totalorder %v2404_v20, 2 }
  0xd3   :  { %v145_v46 = vadd.s32 %v143_v8, %v137_v14  ;;  %v147_v58 = vsel %vm146_vm10, 1, %v1978_v1  ;;  %vm512_vm13 = vweird.f32 %v2070_v9  ;;  %v642_v12 = vand.u32 2147483647, %v641_v56 }
  0xd4   :  { %v644_v28 = vcvt.s32.f32 %v637_v11  ;;  %v651_v37 = vsel %vm2409_vm4, 0, %v649_v5  ;;  %v139_v44 = vshrl.u32 %v135_v42, 16  ;;  %v503_v30 = vadd.f32 1.0, %v502_v39 }
  0xd5   :  { %v510_v34 = vadd.f32 1.0, %v509_v54  ;;  %v2435_v31 = vadd.s32 %v128_v13, %v119_v26  ;;  %v149_v15 = vadd.s32 %v147_v58, %v145_v46  ;;  %vm519_vm14 = vcmp.eq.s32.totalorder %v2404_v20, 2 }
  0xd6   :  { %v645_v51 = vmul.f32 %v644_v28, %v642_v12  ;;  %v141_v49 = vshrl.u32 %v136_v6, 16  ;;  %v214_v38 = vand.u32 2147483647, %v2086_v25  ;;  %v520_v16 = vxor.u32 2147483648, %v503_v30 }
  0xd7   :  { %v511_v55 = vmul.f32 %v510_v34, %v2399_v29  ;;  %v2440_v36 = vadd.s32 %v144_v32, %v140_v2  ;;  %v150_v17 = vadd.s32 %v149_v15, %v139_v44  ;;  %vm1316_vm15 = vcmask 1043456  }
  0xd8   :  { %v646_v5 = vxor.u32 2147483648, %v645_v51  ;;  %v2442_v42 = vand.u32 3, %v651_v37  ;;  %v152_v18 = vmul.u32 %v2350_v0, %v2415_v63  ;;  %v221_v6 = vand.u32 8388607, %v214_v38 }
  0xd9   :  { %v517_v21 = vxor.u32 2147483648, %v511_v55  ;;  %v151_v33 = vadd.s32 %v150_v17, %v141_v49  ;;  %vm154_vm1 = vc.u32 %v2435_v31, %v2440_v36  ;;  %v1138_v29 = vsel %vm1136_vm6, %v520_v16, %v511_v55 }
  0xda   :  { %v647_v43 = vsel %vm526_vm0, %v646_v5, %v645_v51  ;;  %v521_v47 = vsel %vm519_vm14, %v520_v16, %v511_v55  ;;  %v232_v0 = vshrl.u32 %v1982_v53, %v2134_v7  ;;  %v235_v11 = vshrl.u32 %v1984_v62, %v2134_v7 }
  0xdb   :  { %v1135_v63 = vsel %vm1133_vm7, %v503_v30, %v517_v21  ;;  %v650_v59 = vsel %vm2409_vm4, %v2072_v10, %v647_v43  ;;  %v518_v23 = vsel %vm516_vm8, %v503_v30, %v517_v21  ;;  %v155_v19 = vadd.s32 1, %v151_v33 }
  0xdc   :  { %v1139_v45 = vsel %vm1132_vm11, %v1135_v63, %v1138_v29  ;;  %v652_v61 = vmul.f32 %v650_v59, %v650_v59  ;;  %v522_v2 = vsel %vm515_vm12, %v518_v23, %v521_v47  ;;  %v234_v3 = vshll.u32 %v1982_v53, %v2120_v57 }
  0xdd   :  { %v1140_v22 = vsel %vm512_vm13, nan, %v1139_v45  ;;  %v523_v4 = vsel %vm512_vm13, nan, %v522_v2  ;;  %v156_v32 = vsel %vm154_vm1, %v155_v19, %v151_v33  ;;  %v231_v13 = vshll.u32 %v1983_v60, %v2120_v57 }
  0xde   :  { %1885 = vmatpush.msk.msra.mxu0 %vm1316_vm15, %v1140_v22  ;;  %v653_v20 = vmul.f32 -0.001358992, %v652_v61  ;;  %v660_v40 = vmul.f32 -0.00019511016, %v652_v61  ;;  %1895 = vmatpush.msk.msra.mxu2 %vm1316_vm15, %v523_v4  ;;  %v157_v27 = vadd.s32 %v156_v32, %v152_v18  ;;  %v222_v14 = vor.u32 8388608, %v221_v6 }
  0xdf   :  { %v2484_v9 = vor.u32 %v235_v11, %v234_v3  ;;  %v237_v56 = vshll.u32 %v1984_v62, %v2120_v57  ;;  %v238_v26 = vshrl.u32 %v1980_v48, %v2134_v7  ;;  %vm248_vm0 = vcmp.lt.s32.totalorder %v2255_v35, 3 }
  0xe0   :  { %v654_v53 = vadd.f32 0.041655596, %v653_v20  ;;  %v661_v8 = vadd.f32 0.008332121, %v660_v40  ;;  %v158_v39 = vadd.s32 536870912, %v157_v27  ;;  %v668_v54 = vadd.s32 3, %v651_v37 }
  0xe1   :  { %v2491_v46 = vor.u32 %v232_v0, %v231_v13  ;;  %v2493_v58 = vor.u32 %v238_v26, %v237_v56  ;;  %v260_v12 = vsel %vm248_vm0, %v2345_v41, %v2357_v52  ;;  %vm246_vm2 = vcmp.lt.s32.totalorder %v2255_v35, 1 }
  0xe2   :  { %v655_v28 = vmul.f32 %v654_v53, %v652_v61  ;;  %v662_v57 = vmul.f32 %v661_v8, %v652_v61  ;;  %v2499_v62 = vshrl.u32 %v158_v39, 30  ;;  %v255_v48 = vsel %vm249_vm9, %v2345_v41, 920167782 }
  0xe3   :  { %v258_v37 = vsel %vm246_vm2, %v2484_v9, %v2493_v58  ;;  %v2509_v44 = vshll.u32 %v222_v14, 8  ;;  %vm247_vm3 = vcmp.lt.s32.totalorder %v2255_v35, 2  ;;  %v669_v15 = vand.u32 3, %v668_v54 }
  0xe4   :  { %v656_v30 = vadd.f32 -0.4999988, %v655_v28  ;;  %v663_v34 = vadd.f32 -0.16666654, %v662_v57  ;;  %v160_v52 = vshll.u32 %v2499_v62, 30  ;;  %v254_v51 = vsel %vm246_vm2, %v2491_v46, %v2484_v9 }
  0xe5   :  { %v261_v41 = vsel %vm247_vm3, %v258_v37, %v260_v12  ;;  %vm1286_vm4 = vcmp.lt.s32.totalorder %v2442_v42, 2  ;;  %v256_v17 = vsel %vm248_vm0, %v2493_v58, %v255_v48  ;;  %vm667_vm5 = vweird.f32 %v2072_v10 }
  0xe6   :  { %v657_v49 = vmul.f32 %v656_v30, %v652_v61  ;;  %v664_v55 = vmul.f32 %v663_v34, %v652_v61  ;;  %v161_v16 = vsub.s32 %v157_v27, %v160_v52  ;;  %v263_v5 = vand.u32 65535, %v2509_v44 }
  0xe7   :  { %v264_v18 = vshrl.u32 %v2509_v44, 16  ;;  %v265_v21 = vand.u32 65535, %v261_v41  ;;  %v266_v33 = vshrl.u32 %v261_v41, 16  ;;  %vm1287_vm7 = vcmp.eq.s32.totalorder %v2442_v42, 0 }
  0xe8   :  { %v658_v6 = vadd.f32 1.0, %v657_v49  ;;  %v665_v29 = vadd.f32 1.0, %v664_v55  ;;  %vm162_vm6 = vcmp.lt.s32.totalorder %v161_v16, 0  ;;  %v163_v43 = vsub.s32 0, %v161_v16 }
  0xe9   :  { %vm1290_vm8 = vcmp.eq.s32.totalorder %v2442_v42, 2  ;;  %v268_v47 = vmul.u32 %v266_v33, %v263_v5  ;;  %v269_v0 = vmul.u32 %v265_v21, %v264_v18  ;;  %vm670_vm10 = vcmp.lt.s32.totalorder %v669_v15, 2 }
  0xea   :  { %v666_v63 = vmul.f32 %v665_v29, %v650_v59  ;;  %v675_v23 = vxor.u32 2147483648, %v658_v6  ;;  %v164_v19 = vsel %vm162_vm6, %v163_v43, %v161_v16  ;;  %vm671_vm11 = vcmp.eq.s32.totalorder %v669_v15, 0 }
  0xeb   :  { %vm674_vm12 = vcmp.eq.s32.totalorder %v669_v15, 2  ;;  %v165_v45 = vclz %v164_v19  ;;  %v257_v61 = vsel %vm247_vm3, %v254_v51, %v256_v17  ;;  %v267_v11 = vmul.u32 %v265_v21, %v263_v5 }
  0xec   :  { %v672_v2 = vxor.u32 2147483648, %v666_v63  ;;  %v270_v22 = vmul.u32 %v266_v33, %v264_v18  ;;  %v271_v4 = vshll.u32 %v268_v47, 16  ;;  %v1292_v32 = vsel %vm1290_vm8, %v675_v23, %v666_v63 }
  0xed   :  { %v676_v3 = vsel %vm674_vm12, %v675_v23, %v666_v63  ;;  %v1862_v20 = vadd.s32 4294967294, %v165_v45  ;;  %v273_v40 = vshll.u32 %v269_v0, 16  ;;  %v153_v42 = vadd.s32 %v2440_v36, %v2435_v31 }
  0xee   :  { %v1289_v59 = vsel %vm1287_vm7, %v658_v6, %v672_v2  ;;  %v673_v27 = vsel %vm671_vm11, %v658_v6, %v672_v2  ;;  %vm275_vm13 = vc.u32 %v267_v11, %v271_v4  ;;  %v277_v13 = vadd.s32 %v271_v4, %v267_v11 }
  0xef   :  { %v1293_v14 = vsel %vm1286_vm4, %v1289_v59, %v1292_v32  ;;  %v677_v56 = vsel %vm670_vm10, %v673_v27, %v676_v3  ;;  %vm1863_vm14 = vcmp.lt.s32.totalorder %v1862_v20, 0  ;;  %v276_v26 = vsel %vm275_vm13, 1, %v1978_v1 }
  0xf0   :  { %v1294_v53 = vsel %vm667_vm5, nan, %v1293_v14  ;;  %v678_v8 = vsel %vm667_vm5, nan, %v677_v56  ;;  %v168_v39 = vsel %vm1863_vm14, 0, %v1862_v20  ;;  %v278_v54 = vadd.s32 %v276_v26, %v270_v22 }
  0xf1   :  { %1890 = vmatpush.msk.msra.mxu1 %vm1316_vm15, %v1294_v53  ;;  %1900 = vmatpush.msk.msra.mxu3 %vm1316_vm15, %v678_v8  ;;  %v169_v12 = vsub.s32 32, %v168_v39  ;;  %v173_v28 = vsub.s32 4294967266, %v168_v39  ;;  %vm279_vm1 = vc.u32 %v277_v13, %v273_v40  ;;  %v272_v57 = vshrl.u32 %v268_v47, 16 }
  0xf2   :  { %v280_v48 = vsel %vm279_vm1, 1, %v1978_v1  ;;  %v287_v37 = vand.u32 65535, %v257_v61  ;;  %v288_v30 = vshrl.u32 %v257_v61, 16  ;;  %v170_v34 = vshll.u32 %v161_v16, %v168_v39 }
  0xf3   :  { %v171_v10 = vshrl.u32 %v153_v42, %v169_v12  ;;  %v174_v52 = vadd.s32 127, %v173_v28  ;;  %v282_v15 = vadd.s32 %v280_v48, %v278_v54  ;;  %v274_v21 = vshrl.u32 %v269_v0, 16 }
  0xf4   :  { %v290_v51 = vmul.u32 %v288_v30, %v263_v5  ;;  %v291_v41 = vmul.u32 %v287_v37, %v264_v18  ;;  %v289_v33 = vmul.u32 %v287_v37, %v263_v5  ;;  %v292_v6 = vmul.u32 %v288_v30, %v264_v18 }
  0xf5   :  { %v172_v49 = vor.u32 %v171_v10, %v170_v34  ;;  %v175_v55 = vshll.u32 %v174_v52, 23  ;;  %v283_v17 = vadd.s32 %v282_v15, %v272_v57  ;;  %v251_v19 = vsel %vm249_vm9, %v2493_v58, 2102212464 }
  0xf6   :  { %v293_v31 = vshll.u32 %v290_v51, 16  ;;  %v295_v43 = vshll.u32 %v291_v41, 16  ;;  %v230_v5 = vshrl.u32 %v1983_v60, %v2134_v7  ;;  %v294_v2 = vshrl.u32 %v290_v51, 16 }
  0xf7   :  { %v176_v36 = vor.u32 4788187, %v175_v55  ;;  %v284_v29 = vadd.s32 %v283_v17, %v274_v21  ;;  %v179_v23 = vcvt.s32.f32 %v172_v49  ;;  %v252_v58 = vsel %vm248_vm0, %v2484_v9, %v251_v19 }
  0xf8   :  { %vm297_vm4 = vc.u32 %v289_v33, %v293_v31  ;;  %v299_v47 = vadd.s32 %v293_v31, %v289_v33  ;;  %v250_v32 = vsel %vm246_vm2, %v230_v5, %v2491_v46  ;;  %vm61_vm9 = vcmp.lt.s32.totalorder %v2084_v24, 0 }
  0xf9   :  { %v177_v63 = vand.u32 2147483647, %v176_v36  ;;  %v298_v16 = vsel %vm297_vm4, 1, %v1978_v1  ;;  %v296_v3 = vshrl.u32 %v291_v41, 16  ;;  %vm2561_vm7 = vcmp.le.f32.partialorder %v59_v50, 0.7853982 }
  0xfa   :  { %v300_v45 = vadd.s32 %v298_v16, %v292_v6  ;;  %vm301_vm5 = vc.u32 %v299_v47, %v295_v43  ;;  %v303_v61 = vadd.s32 %v299_v47, %v295_v43  ;;  %v253_v9 = vsel %vm247_vm3, %v250_v32, %v252_v58  ;;  %v2597_v32 = vld [vmem:[%s2775_s3] sm:$0xff] }
  0xfb   :  { %v180_v0 = vmul.f32 %v179_v23, %v177_v63  ;;  %v302_v18 = vsel %vm301_vm5, 1, %v1978_v1  ;;  %v307_v50 = vmul.u32 %v2509_v44, %v253_v9  ;;  %v183_v14 = vsub.s32 4, %v2499_v62  ;;  %v2612_v9 = vld [vmem:[%s2774_s2 + $0x8] sm:$0xff] }
  0xfc   :  { %v304_v11 = vadd.s32 %v302_v18, %v300_v45  ;;  %v308_v22 = vadd.s32 %v303_v61, %v284_v29  ;;  %vm309_vm6 = vc.u32 %v284_v29, %v303_v61  ;;  %vm202_vm10 = vweird.f32 %v2084_v24 }
  0xfd   :  { %v181_v4 = vxor.u32 2147483648, %v180_v0  ;;  %v184_v35 = vsel %vm61_vm9, %v183_v14, %v2499_v62  ;;  %vm1303_vm1 = vcmask 97280   ;;  %vm216_vm4 = vcmp.lt.s32.totalorder %v2086_v25, 0 }
  0xfe   :  { %v305_v20 = vadd.s32 %v304_v11, %v294_v2  ;;  %v186_v44 = vsel %vm2561_vm7, 0, %v184_v35  ;;  %vm215_vm5 = vcmp.le.f32.partialorder %v214_v38, 0.7853982 }
  0xff   :  { %v182_v60 = vsel %vm61_vm9, %v181_v4, %v180_v0  ;;  %v823_v15 = vand.u32 3, %v186_v44  ;;  %v203_v6 = vadd.s32 3, %v186_v44  ;;  %v2589_v4 = vld [vmem:[%s2774_s2] sm:$0xff] }
 0x100   :  { %v185_v7 = vsel %vm2561_vm7, %v2084_v24, %v182_v60  ;;  %v306_v46 = vadd.s32 %v305_v20, %v296_v3 }
 0x101   :  { %v187_v40 = vmul.f32 %v185_v7, %v185_v7  ;;  %vm825_vm2 = vcmp.eq.s32.totalorder %v823_v15, 0  ;;  %vm828_vm3 = vcmp.eq.s32.totalorder %v823_v15, 2  ;;  %vm824_vm8 = vcmp.lt.s32.totalorder %v823_v15, 2 }
 0x102   :  { %v310_v59 = vadd.s32 1, %v306_v46  ;;  %v204_v23 = vand.u32 3, %v203_v6 }
 0x103   :  { %v188_v27 = vmul.f32 -0.001358992, %v187_v40  ;;  %v195_v13 = vmul.f32 -0.00019511016, %v187_v40 }
 0x104   :  { %v311_v56 = vsel %vm309_vm6, %v310_v59, %v306_v46  ;;  %vm206_vm12 = vcmp.eq.s32.totalorder %v204_v23, 0  ;;  %vm209_vm13 = vcmp.eq.s32.totalorder %v204_v23, 2  ;;  %vm205_vm14 = vcmp.lt.s32.totalorder %v204_v23, 2  ;;  %v1459_v46 = vld [vmem:[%s2776_s4 + $0x10] sm:$0xff]  ;;  %v1711_v23 = vld [vmem:[%s2782_s10] sm:$0xf] }
 0x105   :  { %v189_v26 = vadd.f32 0.041655596, %v188_v27  ;;  %v196_v53 = vadd.f32 0.008332121, %v195_v13  ;;  %v312_v8 = vadd.s32 %v311_v56, %v307_v50 }
 0x107   :  { %v190_v39 = vmul.f32 %v189_v26, %v187_v40  ;;  %v197_v54 = vmul.f32 %v196_v53, %v187_v40  ;;  %v313_v42 = vadd.s32 536870912, %v312_v8 }
 0x109   :  { %v191_v12 = vadd.f32 -0.4999988, %v190_v39  ;;  %v198_v28 = vadd.f32 -0.16666654, %v197_v54  ;;  %v2578_v57 = vshrl.u32 %v313_v42, 30  ;;  %v1297_v39 = vld [vmem:[%s2774_s2 + $0x10] sm:$0xff] }
 0x10a   :  { %v1503_v54 = vld [vmem:[%s2778_s6 + $0x10] sm:$0xff] }
 0x10b   :  { %v192_v48 = vmul.f32 %v191_v12, %v187_v40  ;;  %v199_v37 = vmul.f32 %v198_v28, %v187_v40  ;;  %v315_v30 = vshll.u32 %v2578_v57, 30  ;;  %v2620_v40 = vld [vmem:[%s2775_s3 + $0x8] sm:$0xff]  ;;  %v1301_v42 = vld [vmem:[%s2775_s3 + $0x10] sm:$0xff] }
 0x10d   :  { %v193_v34 = vadd.f32 1.0, %v192_v48  ;;  %v200_v10 = vadd.f32 1.0, %v199_v37  ;;  %v316_v52 = vsub.s32 %v312_v8, %v315_v30 }
 0x10f   :  { %v201_v51 = vmul.f32 %v200_v10, %v185_v7  ;;  %v210_v41 = vxor.u32 2147483648, %v193_v34  ;;  %vm317_vm0 = vcmp.lt.s32.totalorder %v316_v52, 0  ;;  %v318_v49 = vsub.s32 0, %v316_v52  ;;  %v1298_v10 = vld [vmem:[%s2774_s2 + $0x18] sm:$0xff] }
 0x110   :  { %v338_v7 = vsub.s32 4, %v2578_v57 }
 0x111   :  { %v207_v62 = vxor.u32 2147483648, %v201_v51  ;;  %v319_v55 = vsel %vm317_vm0, %v318_v49, %v316_v52  ;;  %v830_v33 = vsel %vm828_vm3, %v210_v41, %v201_v51  ;;  %v211_v18 = vsel %vm209_vm13, %v210_v41, %v201_v51  ;;  %v1611_v51 = vld [vmem:[%s2780_s8 + $0x18] sm:$0xff]  ;;  %v1458_v49 = vld [vmem:[%s2776_s4 + $0x8] sm:$0xff] }
 0x112   :  { %v320_v17 = vclz %v319_v55  ;;  %v339_v27 = vsel %vm216_vm4, %v338_v7, %v2578_v57  ;;  %v1302_v41 = vld [vmem:[%s2775_s3 + $0x18] sm:$0xff]  ;;  %1468 = vperm.xlu2 %1935, %v1458_v49  }
 0x113   :  { %v827_v21 = vsel %vm825_vm2, %v193_v34, %v207_v62  ;;  %v208_v5 = vsel %vm206_vm12, %v193_v34, %v207_v62  ;;  %v341_v14 = vsel %vm215_vm5, 0, %v339_v27 }
 0x114   :  { %v831_v31 = vsel %vm824_vm8, %v827_v21, %v830_v33  ;;  %v1865_v36 = vadd.s32 4294967294, %v320_v17  ;;  %v212_v11 = vsel %vm205_vm14, %v208_v5, %v211_v18  ;;  %v358_v35 = vadd.s32 3, %v341_v14 }
 0x115   :  { %v832_v29 = vsel %vm202_vm10, nan, %v831_v31  ;;  %v213_v58 = vsel %vm202_vm10, nan, %v212_v11  ;;  %v977_v48 = vand.u32 3, %v341_v14  ;;  %vm357_vm8 = vweird.f32 %v2086_v25  ;;  %v1497_v14 = vld [vmem:[%s2777_s5] sm:$0xff] }
 0x116   :  { %1338 = vmatpush.msra.mxu0 %v832_v29  ;;  %vm1866_vm11 = vcmp.lt.s32.totalorder %v1865_v36, 0  ;;  %1414 = vmatpush.msra.mxu2 %v213_v58  ;;  %v359_v37 = vand.u32 3, %v358_v35  ;;  %vm1525_vm10 = vcmask 261120  }
 0x117   :  { %v323_v43 = vsel %vm1866_vm11, 0, %v1865_v36  ;;  %1886 = vmatmul.msk.f32.vlgmr.msra.gmra.mxu0 %vm1303_vm1, %v2597_v32  ;;  %1896 = vmatmul.msk.f32.vlgmr.msra.gmra.mxu2 %vm1303_vm1, %v2589_v4  ;;  %vm982_vm6 = vcmp.eq.s32.totalorder %v977_v48, 2  ;;  %vm979_vm7 = vcmp.eq.s32.totalorder %v977_v48, 0  ;;  %vm978_vm2 = vcmp.lt.s32.totalorder %v977_v48, 2 }
 0x118   :  { %v324_v47 = vsub.s32 32, %v323_v43  ;;  %v328_v63 = vsub.s32 4294967266, %v323_v43  ;;  %v325_v16 = vshll.u32 %v316_v52, %v323_v43  ;;  %vm364_vm9 = vcmp.eq.s32.totalorder %v359_v37, 2  ;;  %v1608_v43 = vld [vmem:[%s2780_s8] sm:$0xff] }
 0x119   :  { %vm361_vm0 = vcmp.eq.s32.totalorder %v359_v37, 0  ;;  %vm360_vm3 = vcmp.lt.s32.totalorder %v359_v37, 2 }
 0x11a   :  { %v326_v19 = vshrl.u32 %v308_v22, %v324_v47  ;;  %v329_v45 = vadd.s32 127, %v328_v63  ;;  %v1460_v22 = vld [vmem:[%s2776_s4 + $0x18] sm:$0xff]  ;;  %v1457_v47 = vld [vmem:[%s2776_s4] sm:$0xff]  ;;  %v1610_v63 = vld [vmem:[%s2780_s8 + $0x10] sm:$0xff] }
 0x11b   :  { %1478 = vperm.xlu1 %1934, %v1460_v22   ;;  %1463 = vperm.xlu2 %1935, %v1457_v47  }
 0x11c   :  { %v327_v61 = vor.u32 %v326_v19, %v325_v16  ;;  %v330_v0 = vshll.u32 %v329_v45, 23 }
 0x11e   :  { %v331_v2 = vor.u32 4788187, %v330_v0  ;;  %v334_v20 = vcvt.s32.f32 %v327_v61 }
 0x11f   :  { %1887 = vmatmul.msk.f32.gmra.mxu0 %vm1303_vm1, %v2620_v40  ;;  %1897 = vmatmul.msk.f32.gmra.mxu2 %vm1303_vm1, %v2612_v9 }
 0x120   :  { %v332_v3 = vand.u32 2147483647, %v331_v2 }
 0x122   :  { %v335_v1 = vmul.f32 %v334_v20, %v332_v3 }
 0x123   :  { %1473 = vperm.xlu1 %1934, %v1459_v46  }
 0x124   :  { %v336_v60 = vxor.u32 2147483648, %v335_v1 }
 0x126   :  { %v337_v24 = vsel %vm216_vm4, %v336_v60, %v335_v1 }
 0x127   :  { %v340_v59 = vsel %vm215_vm5, %v2086_v25, %v337_v24  ;;  %1888 = vmatmul.msk.f32.gmra.mxu0 %vm1303_vm1, %v1301_v42  ;;  %1898 = vmatmul.msk.f32.gmra.mxu2 %vm1303_vm1, %v1297_v39  ;;  %v1502_v25 = vld [vmem:[%s2778_s6 + $0x8] sm:$0xff] }
 0x128   :  { %v342_v38 = vmul.f32 %v340_v59, %v340_v59  ;;  %1512 = vperm.xlu2 %1935, %v1502_v25  }
 0x12a   :  { %v343_v13 = vmul.f32 -0.001358992, %v342_v38  ;;  %v350_v50 = vmul.f32 -0.00019511016, %v342_v38 }
 0x12b   :  { %1517 = vperm.xlu1 %1934, %v1503_v54   ;;  %v1499_v54 = vld [vmem:[%s2777_s5 + $0x10] sm:$0xff] }
 0x12c   :  { %v344_v56 = vadd.f32 0.041655596, %v343_v13  ;;  %v351_v26 = vadd.f32 0.008332121, %v350_v50 }
 0x12e   :  { %v345_v53 = vmul.f32 %v344_v56, %v342_v38  ;;  %v352_v8 = vmul.f32 %v351_v26, %v342_v38 }
 0x12f   :  { %1889 = vmatmul.msk.f32.gmra.mxu0 %vm1303_vm1, %v1302_v41  ;;  %1899 = vmatmul.msk.f32.gmra.mxu2 %vm1303_vm1, %v1298_v10 }
 0x130   :  { %v346_v12 = vadd.f32 -0.4999988, %v345_v53  ;;  %v353_v28 = vadd.f32 -0.16666654, %v352_v8  ;;  %1624 = vperm.xlu2 %1935, %v1610_v63   ;;  %v1498_v53 = vld [vmem:[%s2777_s5 + $0x8] sm:$0xff] }
 0x132   :  { %v347_v57 = vmul.f32 %v346_v12, %v342_v38  ;;  %v354_v44 = vmul.f32 %v353_v28, %v342_v38 }
 0x133   :  { %1629 = vperm.xlu1 %1934, %v1611_v51  }
 0x134   :  { %v348_v30 = vadd.f32 1.0, %v347_v57  ;;  %v355_v34 = vadd.f32 1.0, %v354_v44 }
 0x136   :  { %v356_v52 = vmul.f32 %v355_v34, %v340_v59  ;;  %v365_v15 = vxor.u32 2147483648, %v348_v30  ;;  %v1500_v34 = vld [vmem:[%s2777_s5 + $0x18] sm:$0xff] }
 0x138   :  { %v362_v62 = vxor.u32 2147483648, %v356_v52  ;;  %v984_v55 = vsel %vm982_vm6, %v365_v15, %v356_v52  ;;  %v366_v17 = vsel %vm364_vm9, %v365_v15, %v356_v52  ;;  %1714 = vperm.xlu2 %1935, %v1711_v23  }
 0x13a   :  { %v981_v21 = vsel %vm979_vm7, %v348_v30, %v362_v62  ;;  %v363_v33 = vsel %vm361_vm0, %v348_v30, %v362_v62 }
 0x13b   :  { %v985_v31 = vsel %vm978_vm2, %v981_v21, %v984_v55  ;;  %v367_v36 = vsel %vm360_vm3, %v363_v33, %v366_v17  ;;  %1614 = vperm.xlu1 %1934, %v1608_v43   ;;  %v1523_v55 = vpop.permute.xlu0 %1522 }
 0x13c   :  { %v986_v6 = vsel %vm357_vm8, nan, %v985_v31  ;;  %v368_v29 = vsel %vm357_vm8, nan, %v367_v36 }
 0x13d   :  { %1367 = vmatpush.msra.mxu1 %v986_v6  ;;  %1443 = vmatpush.msra.mxu3 %v368_v29 }
 0x13e   :  { %1901 = vmatmul.msk.f32.vlgmr.msra.gmra.mxu3 %vm1303_vm1, %v2589_v4  ;;  %1891 = vmatmul.msk.f32.vlgmr.msra.gmra.mxu1 %vm1303_vm1, %v2597_v32 }
 0x143   :  { %v1508_v43 = vpop.permute.xlu0 %1507 }
 0x146   :  { %1902 = vmatmul.msk.f32.gmra.mxu3 %vm1303_vm1, %v2612_v9  ;;  %1892 = vmatmul.msk.f32.gmra.mxu1 %vm1303_vm1, %v2620_v40 }
 0x14e   :  { %1903 = vmatmul.msk.f32.gmra.mxu3 %vm1303_vm1, %v1297_v39  ;;  %1893 = vmatmul.msk.f32.gmra.mxu1 %vm1303_vm1, %v1301_v42 }
 0x156   :  { %1904 = vmatmul.msk.f32.gmra.mxu3 %vm1303_vm1, %v1298_v10  ;;  %1894 = vmatmul.msk.f32.gmra.mxu1 %vm1303_vm1, %v1302_v41 }
 0x16c   :  { %v1469_v2 = vpop.permute.xlu2 %1468 }
 0x175   :  { %v1464_v40 = vpop.permute.xlu2 %1463 }
 0x182   :  { %v1513_v36 = vpop.permute.xlu2 %1512 }
 0x18d   :  { %v1479_v5 = vpop.permute.xlu1 %1478 }
 0x194   :  { %v1340_v16 = vpop.f32.mrf.mxu0 }
 0x195   :  { %v1474_v20 = vpop.permute.xlu1 %1473 }
 0x19a   :  { %v1416_v19 = vpop.f32.mrf.mxu2 }
 0x19b   :  { %v1417_v1 = vadd.f32 %v1416_v19, %v1340_v16  ;;  %v1604_v19 = vld [vmem:[%s2779_s7] sm:$0xff] }
 0x19c   :  { %v1343_v45 = vpop.f32.mrf.mxu0 }
 0x19d   :  { %v1481_v27 = vadd.f32 %v1464_v40, %v1417_v1  ;;  %v1518_v17 = vpop.permute.xlu1 %1517 }
 0x19f   :  { %v1489_v50 = vmax.f32 %v1481_v27, 0.0  ;;  %v1620_v27 = vpop.permute.xlu0 %1619 }
 0x1a2   :  { %v1419_v61 = vpop.f32.mrf.mxu2 }
 0x1a3   :  { %v1420_v58 = vadd.f32 %v1419_v61, %v1343_v45  ;;  %v1605_v61 = vld [vmem:[%s2779_s7 + $0x8] sm:$0xff] }
 0x1a4   :  { %v1346_v0 = vpop.f32.mrf.mxu0 }
 0x1a5   :  { %v1483_v46 = vadd.f32 %v1469_v2, %v1420_v58 }
 0x1a7   :  { %v1491_v13 = vmax.f32 %v1483_v46, 0.0  ;;  %v1625_v46 = vpop.permute.xlu2 %1624 }
 0x1aa   :  { %v1422_v18 = vpop.f32.mrf.mxu2 }
 0x1ab   :  { %v1423_v22 = vadd.f32 %v1422_v18, %v1346_v0 }
 0x1ac   :  { %v1349_v11 = vpop.f32.mrf.mxu0 }
 0x1ad   :  { %v1485_v7 = vadd.f32 %v1474_v20, %v1423_v22 }
 0x1af   :  { %v1493_v38 = vmax.f32 %v1485_v7, 0.0 }
 0x1b2   :  { %v1425_v32 = vpop.f32.mrf.mxu2 }
 0x1b3   :  { %v1426_v3 = vadd.f32 %v1425_v32, %v1349_v11  ;;  %v1607_v32 = vld [vmem:[%s2779_s7 + $0x18] sm:$0xff] }
 0x1b5   :  { %v1487_v60 = vadd.f32 %v1479_v5, %v1426_v3 }
 0x1b7   :  { %v1495_v9 = vmax.f32 %v1487_v60, 0.0 }
 0x1b9   :  { %1550 = vmatpush.msrb.mxu0 %v1495_v9  ;;  %v1630_v9 = vpop.permute.xlu1 %1629 }
 0x1bb   :  { %v1369_v4 = vpop.f32.mrf.mxu1  ;;  %1551 = vmatpush.msrb.mxu0 %v1493_v38 }
 0x1bd   :  { %1552 = vmatpush.msrb.mxu0 %v1491_v13 }
 0x1bf   :  { %1553 = vmatpush.msrb.mxu0 %v1489_v50 }
 0x1c0   :  { %1905 = vmatmul.msk.f32.vlgmr.msrb.gmra.mxu0 %vm1525_vm10, %v1497_v14 }
 0x1c1   :  { %v1445_v24 = vpop.f32.mrf.mxu3 }
 0x1c2   :  { %v1446_v57 = vadd.f32 %v1445_v24, %v1369_v4 }
 0x1c3   :  { %v1372_v59 = vpop.f32.mrf.mxu1 }
 0x1c4   :  { %v1482_v52 = vadd.f32 %v1464_v40, %v1446_v57 }
 0x1c6   :  { %v1490_v51 = vmax.f32 %v1482_v52, 0.0 }
 0x1c8   :  { %1906 = vmatmul.msk.f32.gmra.mxu0 %vm1525_vm10, %v1498_v53 }
 0x1c9   :  { %v1448_v56 = vpop.f32.mrf.mxu3 }
 0x1ca   :  { %v1449_v12 = vadd.f32 %v1448_v56, %v1372_v59 }
 0x1cb   :  { %v1375_v26 = vpop.f32.mrf.mxu1 }
 0x1cc   :  { %v1484_v30 = vadd.f32 %v1469_v2, %v1449_v12 }
 0x1ce   :  { %v1492_v15 = vmax.f32 %v1484_v30, 0.0 }
 0x1d0   :  { %1907 = vmatmul.msk.f32.gmra.mxu0 %vm1525_vm10, %v1499_v54 }
 0x1d1   :  { %v1451_v8 = vpop.f32.mrf.mxu3 }
 0x1d2   :  { %v1452_v42 = vadd.f32 %v1451_v8, %v1375_v26 }
 0x1d3   :  { %v1378_v39 = vpop.f32.mrf.mxu1 }
 0x1d4   :  { %v1486_v48 = vadd.f32 %v1474_v20, %v1452_v42 }
 0x1d6   :  { %v1494_v10 = vmax.f32 %v1486_v48, 0.0 }
 0x1d8   :  { %1908 = vmatmul.msk.f32.gmra.mxu0 %vm1525_vm10, %v1500_v34 }
 0x1d9   :  { %v1454_v35 = vpop.f32.mrf.mxu3 }
 0x1da   :  { %v1455_v28 = vadd.f32 %v1454_v35, %v1378_v39 }
 0x1dc   :  { %v1488_v44 = vadd.f32 %v1479_v5, %v1455_v28  ;;  %v1606_v5 = vld [vmem:[%s2779_s7 + $0x10] sm:$0xff] }
 0x1de   :  { %v1496_v37 = vmax.f32 %v1488_v44, 0.0 }
 0x1e0   :  { %1579 = vmatpush.msrb.mxu1 %v1496_v37 }
 0x1e2   :  { %1580 = vmatpush.msrb.mxu1 %v1494_v10 }
 0x1e4   :  { %1581 = vmatpush.msrb.mxu1 %v1492_v15  ;;  %v1715_v15 = vpop.permute.xlu2 %1714 }
 0x1e6   :  { %1582 = vmatpush.msrb.mxu1 %v1490_v51 }
 0x1e7   :  { %1909 = vmatmul.msk.f32.vlgmr.msrb.gmra.mxu1 %vm1525_vm10, %v1497_v14  ;;  %v1615_v14 = vpop.permute.xlu1 %1614 }
 0x1ef   :  { %1910 = vmatmul.msk.f32.gmra.mxu1 %vm1525_vm10, %v1498_v53 }
 0x1f7   :  { %1911 = vmatmul.msk.f32.gmra.mxu1 %vm1525_vm10, %v1499_v54  ;;  %v1710_v54 = vld [vmem:[%s2781_s9] sm:$0xf]  ;;  %s1985_s9 = smov [#allocation2]  }
 0x1f8   :  { %s1850_s18 = sshll.u32 %s1985_s9, 4  ;;  %s1851_s18 = int_to_ptr.vmem [resolvable:$true] %s1850_s18 }
 0x1ff   :  { %1912 = vmatmul.msk.f32.gmra.mxu1 %vm1525_vm10, %v1500_v34 }
 0x23d   :  { %v1555_v41 = vpop.f32.mrf.mxu0 }
 0x23e   :  { %v1556_v47 = vadd.f32 %v1555_v41, %v1508_v43 }
 0x240   :  { %v1596_v16 = vmax.f32 %v1556_v47, 0.0 }
 0x245   :  { %v1558_v49 = vpop.f32.mrf.mxu0 }
 0x246   :  { %v1559_v6 = vadd.f32 %v1558_v49, %v1513_v36 }
 0x248   :  { %v1598_v23 = vmax.f32 %v1559_v6, 0.0 }
 0x24d   :  { %v1561_v62 = vpop.f32.mrf.mxu0 }
 0x24e   :  { %v1562_v33 = vadd.f32 %v1561_v62, %v1518_v17 }
 0x250   :  { %v1600_v63 = vmax.f32 %v1562_v33, 0.0 }
 0x255   :  { %v1564_v21 = vpop.f32.mrf.mxu0 }
 0x256   :  { %v1565_v31 = vadd.f32 %v1564_v21, %v1523_v55 }
 0x258   :  { %v1602_v29 = vmax.f32 %v1565_v31, 0.0 }
 0x25a   :  { %1656 = vmatpush.msrb.mxu2 %v1602_v29 }
 0x25c   :  { %1657 = vmatpush.msrb.mxu2 %v1600_v63 }
 0x25e   :  { %1658 = vmatpush.msrb.mxu2 %v1598_v23 }
 0x260   :  { %1659 = vmatpush.msrb.mxu2 %v1596_v16 }
 0x261   :  { %1913 = vmatmul.msk.f32.vlgmr.msrb.gmra.mxu2 %vm1525_vm10, %v1604_v19 }
 0x264   :  { %v1584_v25 = vpop.f32.mrf.mxu1 }
 0x265   :  { %v1585_v58 = vadd.f32 %v1584_v25, %v1508_v43 }
 0x267   :  { %v1597_v1 = vmax.f32 %v1585_v58, 0.0 }
 0x269   :  { %1914 = vmatmul.msk.f32.gmra.mxu2 %vm1525_vm10, %v1605_v61 }
 0x26c   :  { %v1587_v45 = vpop.f32.mrf.mxu1 }
 0x26d   :  { %v1588_v4 = vadd.f32 %v1587_v45, %v1513_v36 }
 0x26f   :  { %v1599_v20 = vmax.f32 %v1588_v4, 0.0 }
 0x271   :  { %1915 = vmatmul.msk.f32.gmra.mxu2 %vm1525_vm10, %v1606_v5 }
 0x274   :  { %v1590_v0 = vpop.f32.mrf.mxu1 }
 0x275   :  { %v1591_v2 = vadd.f32 %v1590_v0, %v1518_v17 }
 0x277   :  { %v1601_v3 = vmax.f32 %v1591_v2, 0.0 }
 0x279   :  { %1916 = vmatmul.msk.f32.gmra.mxu2 %vm1525_vm10, %v1607_v32 }
 0x27c   :  { %v1593_v18 = vpop.f32.mrf.mxu1 }
 0x27d   :  { %v1594_v11 = vadd.f32 %v1593_v18, %v1523_v55 }
 0x27f   :  { %v1603_v22 = vmax.f32 %v1594_v11, 0.0 }
 0x281   :  { %1685 = vmatpush.msrb.mxu3 %v1603_v22 }
 0x283   :  { %1686 = vmatpush.msrb.mxu3 %v1601_v3  ;;  %v1760_v3 = vlaneseq }
 0x285   :  { %1687 = vmatpush.msrb.mxu3 %v1599_v20 }
 0x287   :  { %1688 = vmatpush.msrb.mxu3 %v1597_v1 }
 0x288   :  { %1917 = vmatmul.msk.f32.vlgmr.msrb.gmra.mxu3 %vm1525_vm10, %v1604_v19 }
 0x290   :  { %1918 = vmatmul.msk.f32.gmra.mxu3 %vm1525_vm10, %v1605_v61 }
 0x298   :  { %1919 = vmatmul.msk.f32.gmra.mxu3 %vm1525_vm10, %v1606_v5 }
 0x2a0   :  { %1920 = vmatmul.msk.f32.gmra.mxu3 %vm1525_vm10, %v1607_v32 }
 0x2e4   :  { %v1661_v60 = vpop.f32.mrf.mxu2 }
 0x2e5   :  { %v1662_v56 = vadd.f32 %v1661_v60, %v1615_v14 }
 0x2e7   :  { %v1702_v39 = vmax.f32 %v1662_v56, 0.0 }
 0x2ec   :  { %v1664_v7 = vpop.f32.mrf.mxu2 }
 0x2ed   :  { %v1665_v13 = vadd.f32 %v1664_v7, %v1620_v27 }
 0x2ef   :  { %v1704_v8 = vmax.f32 %v1665_v13, 0.0  ;;  %v1761_v13 = vshrl.u32 %v1760_v3, 7 }
 0x2f1   :  { %vm1762_vm9 = vcmp.lt.s32.totalorder %v1761_v13, 3 }
 0x2f4   :  { %v1667_v24 = vpop.f32.mrf.mxu2 }
 0x2f5   :  { %v1668_v59 = vadd.f32 %v1667_v24, %v1625_v46 }
 0x2f7   :  { %v1706_v53 = vmax.f32 %v1668_v59, 0.0 }
 0x2fc   :  { %v1670_v40 = vpop.f32.mrf.mxu2 }
 0x2fd   :  { %v1671_v38 = vadd.f32 %v1670_v40, %v1630_v9 }
 0x2ff   :  { %v1708_v50 = vmax.f32 %v1671_v38, 0.0 }
 0x301   :  { %1732 = vmatpush.msra.mxu0 %v1708_v50 }
 0x303   :  { %1733 = vmatpush.msra.mxu0 %v1706_v53 }
 0x305   :  { %1734 = vmatpush.msra.mxu0 %v1704_v8 }
 0x307   :  { %1735 = vmatpush.msra.mxu0 %v1702_v39 }
 0x308   :  { %1921 = vmatmul.msk.f32.vlgmr.msra.gmra.mxu0 %vm1525_vm10, %v1710_v54 }
 0x30b   :  { %v1690_v26 = vpop.f32.mrf.mxu3 }
 0x30c   :  { %v1691_v37 = vadd.f32 %v1690_v26, %v1615_v14 }
 0x30e   :  { %v1703_v10 = vmax.f32 %v1691_v37, 0.0 }
 0x313   :  { %v1693_v42 = vpop.f32.mrf.mxu3 }
 0x314   :  { %v1694_v44 = vadd.f32 %v1693_v42, %v1620_v27 }
 0x316   :  { %v1705_v34 = vmax.f32 %v1694_v44, 0.0 }
 0x31b   :  { %v1696_v35 = vpop.f32.mrf.mxu3 }
 0x31c   :  { %v1697_v28 = vadd.f32 %v1696_v35, %v1625_v46 }
 0x31e   :  { %v1707_v30 = vmax.f32 %v1697_v28, 0.0 }
 0x323   :  { %v1699_v12 = vpop.f32.mrf.mxu3 }
 0x324   :  { %v1700_v57 = vadd.f32 %v1699_v12, %v1630_v9 }
 0x326   :  { %v1709_v48 = vmax.f32 %v1700_v57, 0.0 }
 0x328   :  { %1752 = vmatpush.msra.mxu1 %v1709_v48 }
 0x32a   :  { %1753 = vmatpush.msra.mxu1 %v1707_v30 }
 0x32c   :  { %1754 = vmatpush.msra.mxu1 %v1705_v34 }
 0x32e   :  { %1755 = vmatpush.msra.mxu1 %v1703_v10 }
 0x32f   :  { %1922 = vmatmul.msk.f32.vlgmr.msra.gmra.mxu1 %vm1525_vm10, %v1710_v54 }
 0x385   :  { %v1737_v52 = vpop.f32.mrf.mxu0 }
 0x386   :  { %v2726_v51 = vadd.f32 %v1737_v52, %v1715_v15 }
 0x388   :  { %v1923_v41 = vmul.f32 -1.442695, %v2726_v51  ;;  %v1807_v49 = vand.u32 2147483647, %v2726_v51  ;;  %v1801_v20 = vmax.f32 %v2726_v51, 0.0  ;;  %vm1803_vm5 = vcmp.ne.f32.partialorder %v2726_v51, %v2726_v51 }
 0x38a   :  { %1936 = vpow2.f32 %v1923_v41  ;;  %v1809_v62 = vsub.f32 0.0, %v1807_v49 }
 0x38c   :  { %v1811_v55 = vmul.f32 1.442695, %v1809_v62 }
 0x38e   :  { %1938 = vpow2.f32 %v1811_v55 }
 0x390   :  { %v1937_v17 = vpop.eup %1936 }
 0x391   :  { %v2730_v21 = vadd.f32 1.0, %v1937_v17 }
 0x393   :  { %1940 = vrcp.f32 %v2730_v21  ;;  %vm1776_vm11 = vweird.f32 %v2730_v21  ;;  %v1780_v9 = vand.u32 2147483647, %v2730_v21  ;;  %v1782_v50 = vand.u32 2147483648, %v2730_v21 }
 0x394   :  { %v1939_v36 = vpop.eup %1938 }
 0x395   :  { %v1815_v47 = vadd.f32 1.0, %v1939_v36  ;;  %v1818_v45 = vmul.f32 -0.5, %v1939_v36  ;;  %v1821_v4 = vand.u32 2147483647, %v1939_v36  ;;  %v1783_v44 = vor.u32 1.1754944e-38, %v1782_v50 }
 0x396   :  { %vm1781_vm0 = vcmp.eq.f32.partialorder %v1780_v9, 8.507059e+37 }
 0x397   :  { %v1819_v11 = vadd.f32 1.0, %v1818_v45  ;;  %vm2741_vm12 = vcmp.lt.f32.partialorder %v1821_v4, 0.0004427343 }
 0x399   :  { %v1941_v63 = vpop.eup %1940  ;;  %v1820_v7 = vmul.f32 %v1939_v36, %v1819_v11 }
 0x39a   :  { %v1772_v16 = vmul.f32 %v1941_v63, %v2730_v21  ;;  %vm1777_vm13 = vweird.f32 %v1941_v63 }
 0x39b   :  { %vm2751_vm4 = vmor %vm1776_vm11, %vm1777_vm13 }
 0x39c   :  { %v1773_v0 = vsub.f32 1.0, %v1772_v16 }
 0x39e   :  { %v1774_v22 = vmul.f32 %v1941_v63, %v1773_v0 }
 0x3a0   :  { %v1775_v40 = vadd.f32 %v1941_v63, %v1774_v22 }
 0x3a2   :  { %v1779_v12 = vsel %vm2751_vm4, %v1941_v63, %v1775_v40 }
 0x3a3   :  { %v1784_v30 = vsel %vm1781_vm0, %v1783_v44, %v1779_v12 }
 0x3ac   :  { %v1757_v33 = vpop.f32.mrf.mxu1 }
 0x3ad   :  { %v2732_v31 = vadd.f32 %v1757_v33, %v1715_v15 }
 0x3af   :  { %v1924_v6 = vmul.f32 -1.442695, %v2732_v31  ;;  %v1808_v29 = vand.u32 2147483647, %v2732_v31  ;;  %v1802_v39 = vmax.f32 %v2732_v31, 0.0  ;;  %vm1804_vm3 = vcmp.ne.f32.partialorder %v2732_v31, %v2732_v31 }
 0x3b1   :  { %1942 = vpow2.f32 %v1924_v6  ;;  %v1810_v43 = vsub.f32 0.0, %v1808_v29 }
 0x3b3   :  { %v1813_v25 = vmul.f32 1.442695, %v1810_v43 }
 0x3b5   :  { %1944 = vpow2.f32 %v1813_v25 }
 0x3b6   :  { %1946 = vlog2.f32 %v1815_v47 }
 0x3b7   :  { %v1943_v23 = vpop.eup %1942 }
 0x3b8   :  { %v1770_v19 = vadd.f32 1.0, %v1943_v23 }
 0x3ba   :  { %1948 = vrcp.f32 %v1770_v19  ;;  %v1795_v14 = vand.u32 2147483647, %v1770_v19  ;;  %v1797_v56 = vand.u32 2147483648, %v1770_v19  ;;  %vm1791_vm6 = vweird.f32 %v1770_v19 }
 0x3bb   :  { %v1945_v61 = vpop.eup %1944 }
 0x3bc   :  { %v1947_v5 = vpop.eup %1946  ;;  %v1824_v18 = vadd.f32 1.0, %v1945_v61  ;;  %v1827_v2 = vmul.f32 -0.5, %v1945_v61  ;;  %v1830_v24 = vand.u32 2147483647, %v1945_v61  ;;  %v1798_v48 = vor.u32 1.1754944e-38, %v1797_v56 }
 0x3bd   :  { %v1817_v32 = vmul.f32 0.6931472, %v1947_v5  ;;  %vm1796_vm2 = vcmp.eq.f32.partialorder %v1795_v14, 8.507059e+37 }
 0x3be   :  { %1950 = vlog2.f32 %v1824_v18  ;;  %v1828_v1 = vadd.f32 1.0, %v1827_v2  ;;  %vm1831_vm1 = vcmp.lt.f32.partialorder %v1830_v24, 0.0004427343 }
 0x3bf   :  { %v1823_v38 = vsel %vm2741_vm12, %v1820_v7, %v1817_v32 }
 0x3c0   :  { %v1949_v58 = vpop.eup %1948  ;;  %v1829_v53 = vmul.f32 %v1945_v61, %v1828_v1  ;;  %v1833_v42 = vadd.f32 %v1823_v38, %v1801_v20 }
 0x3c1   :  { %v1787_v60 = vmul.f32 %v1949_v58, %v1770_v19  ;;  %vm1792_vm14 = vweird.f32 %v1949_v58 }
 0x3c2   :  { %vm1793_vm7 = vmor %vm1791_vm6, %vm1792_vm14  ;;  %v1835_v10 = vsel %vm1803_vm5, %v2726_v51, %v1833_v42 }
 0x3c3   :  { %v1788_v59 = vsub.f32 1.0, %v1787_v60  ;;  %v1837_v49 = vsel %vm1762_vm9, %v1784_v30, %v1835_v10 }
 0x3c4   :  { %v1951_v27 = vpop.eup %1950 }
 0x3c5   :  { %v1826_v26 = vmul.f32 0.6931472, %v1951_v27  ;;  %v1789_v8 = vmul.f32 %v1949_v58, %v1788_v59 }
 0x3c7   :  { %v1832_v35 = vsel %vm1831_vm1, %v1829_v53, %v1826_v26  ;;  %v1790_v28 = vadd.f32 %v1949_v58, %v1789_v8 }
 0x3c8   :  { %v1834_v57 = vadd.f32 %v1832_v35, %v1802_v39 }
 0x3c9   :  { %v1794_v37 = vsel %vm1793_vm7, %v1949_v58, %v1790_v28 }
 0x3ca   :  { %v1799_v34 = vsel %vm1796_vm2, %v1798_v48, %v1794_v37  ;;  %v1836_v52 = vsel %vm1804_vm3, %v2732_v31, %v1834_v57 }
 0x3cb   :  { %v1838_v15 = vsel %vm1762_vm9, %v1799_v34, %v1836_v52 }
 0x3cc   :  { %v1841_v41 = vrot.slane %v1838_v15, 4 }
 0x3ce   :  { %v1842_v62 = vsel %vm1316_vm15, %v1837_v49, %v1841_v41 }
 0x3cf   :  { %1844 = vst [vmem:[#allocation2] sm:$0xff] %v1842_v62 }
 0x3d0   :  { %1855 = dma.vmem_to_hbm [thread:$0]  %s1851_s18, 128, %s1853_s19, [#allocation3]  }
 0x3d1   :  { %1976 = dma.done.wait [#allocation3], 128  }
 0x3d2   :  { %1977 = vsyncadd [#allocation3], 4294967168 }
 0x3d3   :  { %1860 = vsyncpa [#allocation3], 1 }

</bundles_post_ra>
